<compile_context>
chip_gen: v5e
topology: v5e:2x2
jax: 0.10.0
libtpu: 0.0.40
codegen_flags: <defaults>
</compile_context>

<pallas_src>
import functools
import math

import jax
import jax.numpy as jnp
from jax.experimental import pallas as pl
from jax.experimental.pallas import tpu as pltpu


# ----------------------------------------------------------------------------
# Kernel: one (batch, time-tile) grid step.
# Layout: channels on sublanes, time on the 128 lanes throughout.
# ----------------------------------------------------------------------------
def _encoder_kernel(lens_ref,                                    # (B,) int32, SMEM prefetch
                    x_ref, halo_ref,                             # (1,H,Tt) bf16, (1,1,H,hw) bf16
                    wconv_ref, bconv_ref, wproj_ref, bproj_ref,  # fused weights (VMEM-resident)
                    enc_ref, m_ref, logs_ref,                    # (1,H,Tt), (1,C,Tt), (1,C,Tt)
                    *, n_layers, kernel_size, halo, seq_len, out_channels,
                    mask_inside_encoder):
    L, K, C = n_layers, kernel_size, out_channels
    pad = (K - 1) // 2
    _, H, t_tile = x_ref.shape

    b = pl.program_id(0)
    t = pl.program_id(1)
    t0 = t * t_tile                       # absolute time position of this tile's start
    length = lens_ref[b]
    upper = length if mask_inside_encoder else seq_len

    # Receptive-field window: [left halo | tile | right halo] along the lanes.
    if halo > 0:
        hs = halo_ref[0, 0]                                           # (H, 2*halo) bf16
        win = jnp.concatenate(
            [hs[:, :halo], x_ref[0], hs[:, halo:2 * halo]], axis=1)   # (H, t_tile + 2*halo)
    else:
        win = x_ref[0]

    x_f32 = None
    for l in range(L):
        off_out = halo - (l + 1) * pad     # left offset of this layer's output columns
        w_out = t_tile + 2 * off_out
        # K taps = K lane-shifted slices -> K small bf16 MXU matmuls, f32 accumulation.
        acc = jnp.dot(wconv_ref[l, 0], win[:, 0:w_out],
                      preferred_element_type=jnp.float32)
        for k in range(1, K):
            acc = acc + jnp.dot(wconv_ref[l, k], win[:, k:k + w_out],
                                preferred_element_type=jnp.float32)
        ab = acc + bconv_ref[l]                                       # (2H, w_out) f32
        y = jnp.tanh(ab[:H, :]) * jax.nn.sigmoid(ab[H:, :])           # (H, w_out) f32, lane-dense
        # Zero positions outside the real sequence so deeper layers see exactly
        # the zero "same" padding the reference Conv1d would.
        pos = t0 - off_out + jax.lax.broadcasted_iota(jnp.int32, (1, w_out), 1)
        y = jnp.where((pos >= 0) & (pos < upper), y, 0.0)
        # TODO(synk): nn.Dropout(p_dropout) is identity in eval mode; omitted.
        if l == L - 1:
            x_f32 = y                      # (H, t_tile) final encoder features
        else:
            win = y.astype(jnp.bfloat16)   # bf16 only as the next MXU operand

    # Encoder output: already channels-major with T on the lanes -> no transpose.
    enc_ref[0] = x_f32.astype(enc_ref.dtype)

    # Fused 1x1 projection: (2C, H) @ (H, t_tile), bias, length mask, split.
    stats = jnp.dot(wproj_ref[...], x_f32.astype(jnp.bfloat16),
                    preferred_element_type=jnp.float32) + bproj_ref[...]
    lane_pos = t0 + jax.lax.broadcasted_iota(jnp.int32, (1, t_tile), 1)
    stats = jnp.where(lane_pos < length, stats, 0.0)
    m_ref[0] = stats[:C, :].astype(m_ref.dtype)
    logs_ref[0] = stats[C:, :].astype(logs_ref.dtype)


# ----------------------------------------------------------------------------
# Tiling / VMEM helpers
# ----------------------------------------------------------------------------
def _round_up(x, m):
    return ((x + m - 1) // m) * m


def _vmem_budget_bytes():
    """~75% of this generation's VMEM; 48 MiB fallback (safe on v7x's 64 MiB)."""
    cap = None
    try:
        cap = getattr(pltpu.get_tpu_info(), 'vmem_capacity_bytes', None)
    except Exception:
        cap = None
    if not cap:
        cap = 64 * 2 ** 20
    return (int(cap) * 3) // 4


def _vmem_estimate(t_tile, halo, H, C, L, K):
    """Rough per-step VMEM working set (resident weights, double-buffered I/O, temps)."""
    w = t_tile + 2 * halo
    hw = max(2 * halo, 8)
    weights = 2 * (L * K * 2 * H * H * 2 + L * 2 * H * 4 + 2 * C * H * 2 + 2 * C * 4)
    io = 2 * (H * t_tile * 2 + H * hw * 2) + 2 * (H + 2 * C) * t_tile * 4
    work = (H * w * 2            # assembled window (bf16)
            + K * H * w * 2      # lane-shifted tap slices (bf16)
            + 3 * 2 * H * w * 4  # f32 accumulator / gate temps
            + 2 * H * w * 4)     # y + next-layer cast
    return weights + io + work


def _choose_tiling(T, B, halo, H, C, L, K, budget):
    """Lane-aligned time tile: as large as sensible, bounded by VMEM and padding
    waste, with >= 2 grid steps when possible (v7x has two TensorCores)."""
    t_min = max(128, _round_up(max(halo, 1), 128))
    t_cap = max(t_min, _round_up(T, 128))
    base = _round_up(T, 128)
    t_tile = t_min
    for cand in (2048, 1024, 512, 256, 128):
        if cand > t_cap or cand < t_min:
            continue
        if _round_up(T, cand) - base > base // 4:
            continue                      # too much padding waste
        if 2 * _vmem_estimate(cand, halo, H, C, L, K) > budget:
            continue
        t_tile = cand
        break
    T_pad = _round_up(T, t_tile)
    if B * (T_pad // t_tile) < 2 and t_tile > 128:
        T_pad2 = _round_up(T, 256)
        if T_pad2 // 2 >= t_min:
            t_tile, T_pad = T_pad2 // 2, T_pad2
    return t_tile, T_pad


# ----------------------------------------------------------------------------
# Wrapper: embedding lookup, masking, halo slivers, weight fusion, pallas_call.
# ----------------------------------------------------------------------------
@functools.partial(jax.jit,
                   static_argnames=('hidden_channels', 'out_channels',
                                    'mask_inside_encoder'))
def conv_text_encoder(tokens, x_lengths, params, *, hidden_channels, out_channels,
                      mask_inside_encoder=False):
    B, T = tokens.shape
    H, C = hidden_channels, out_channels
    L, K = params['conv_w_a'].shape[:2]
    pad = (K - 1) // 2
    halo = L * pad

    budget = _vmem_budget_bytes()
    t_tile, T_pad = _choose_tiling(T, B, halo, H, C, L, K, budget)
    nT = T_pad // t_tile

    # --- glue: embedding + sqrt(H) scale + input mask, channels-major bf16 ---
    x = jnp.take(params['emb_w'], tokens, axis=0) * math.sqrt(H)        # (B,T,H) f32
    seq_mask = jnp.arange(T)[None, :] < x_lengths[:, None]              # (B,T) bool
    x = jnp.where(seq_mask[:, :, None], x, 0.0).astype(jnp.bfloat16)
    x_cm = jnp.transpose(x, (0, 2, 1))                                  # (B,H,T)
    x_cm = jnp.pad(x_cm, ((0, 0), (0, 0), (0, T_pad - T)))              # (B,H,T_pad)

    # --- per-tile halo slivers [left halo | right halo], channels-major ------
    hw = 2 * halo if halo > 0 else 8
    if halo > 0:
        x_ext = jnp.pad(x_cm, ((0, 0), (0, 0), (halo, halo)))           # (B,H,T_pad+2*halo)
        lefts = x_ext[:, :, :T_pad].reshape(B, H, nT, t_tile)[..., :halo]
        rights = x_ext[:, :, 2 * halo:].reshape(B, H, nT, t_tile)[..., t_tile - halo:]
        sliver = jnp.moveaxis(jnp.concatenate([lefts, rights], axis=-1), 1, 2)
    else:
        sliver = jnp.zeros((B, nT, H, hw), jnp.bfloat16)                # unused dummy

    # --- fused, MXU-friendly weight layouts (bf16 operands, f32 biases) ------
    w_conv = jnp.concatenate([params['conv_w_a'], params['conv_w_b']], axis=-1)  # (L,K,H,2H)
    w_conv = jnp.swapaxes(w_conv, -1, -2).astype(jnp.bfloat16)                   # (L,K,2H,H)
    b_conv = jnp.concatenate([params['conv_b_a'], params['conv_b_b']], axis=-1)
    b_conv = b_conv.reshape(L, 2 * H, 1).astype(jnp.float32)                     # (L,2H,1)
    w_proj = jnp.concatenate([params['proj_w_m'].T, params['proj_w_s'].T], axis=0)
    w_proj = w_proj.astype(jnp.bfloat16)                                         # (2C,H)
    b_proj = jnp.concatenate([params['proj_b_m'], params['proj_b_s']], axis=-1)
    b_proj = b_proj.reshape(2 * C, 1).astype(jnp.float32)                        # (2C,1)

    kernel = functools.partial(
        _encoder_kernel, n_layers=L, kernel_size=K, halo=halo, seq_len=T,
        out_channels=C, mask_inside_encoder=mask_inside_encoder)

    grid_spec = pltpu.PrefetchScalarGridSpec(
        num_scalar_prefetch=1,                       # x_lengths -> SMEM
        grid=(B, nT),
        in_specs=[
            # current tile, channels-major (fetched exactly once)
            pl.BlockSpec((1, H, t_tile), lambda b, t, lens: (b, 0, t)),
            # tiny per-tile halo sliver
            pl.BlockSpec((1, 1, H, hw), lambda b, t, lens: (b, t, 0, 0)),
            # weights: constant block index -> stay VMEM-resident across steps
            # (single-buffering them only matters once L*K*H*2H reaches multi-MB)
            pl.BlockSpec((L, K, 2 * H, H), lambda b, t, lens: (0, 0, 0, 0)),
            pl.BlockSpec((L, 2 * H, 1), lambda b, t, lens: (0, 0, 0)),
            pl.BlockSpec((2 * C, H), lambda b, t, lens: (0, 0)),
            pl.BlockSpec((2 * C, 1), lambda b, t, lens: (0, 0)),
        ],
        out_specs=(
            pl.BlockSpec((1, H, t_tile), lambda b, t, lens: (b, 0, t)),
            pl.BlockSpec((1, C, t_tile), lambda b, t, lens: (b, 0, t)),
            pl.BlockSpec((1, C, t_tile), lambda b, t, lens: (b, 0, t)),
        ),
    )

    est = _vmem_estimate(t_tile, halo, H, C, L, K)
    vmem_limit = int(min(max(2 * est, 32 * 2 ** 20), budget))

    enc, m, logs = pl.pallas_call(
        kernel,
        out_shape=(jax.ShapeDtypeStruct((B, H, T_pad), jnp.float32),
                   jax.ShapeDtypeStruct((B, C, T_pad), jnp.float32),
                   jax.ShapeDtypeStruct((B, C, T_pad), jnp.float32)),
        grid_spec=grid_spec,
        compiler_params=pltpu.CompilerParams(
            dimension_semantics=("parallel", "parallel"),
            vmem_limit_bytes=vmem_limit),
    )(x_lengths.astype(jnp.int32), x_cm, sliver, w_conv, b_conv, w_proj, b_proj)

    if T_pad != T:
        enc, m, logs = enc[:, :, :T], m[:, :, :T], logs[:, :, :T]
    x_mask = seq_mask[:, None, :].astype(jnp.float32)                   # (B,1,T)
    return enc, m, logs, x_mask


# ----------------------------------------------------------------------------
# Parameter init (same conventions as before)
# ----------------------------------------------------------------------------
def init_params(key, *, n_vocab, hidden_channels, out_channels, n_layers, kernel_size):
    H, C, L, K = hidden_channels, out_channels, n_layers, kernel_size
    ks = jax.random.split(key, 6)
    return {
        # nn.init.normal_(emb.weight, 0.0, H ** -0.5)
        'emb_w':    jax.random.normal(ks[0], (n_vocab, H), jnp.float32) * H ** (-0.5),
        # GatedTanhConv1d weights (tap-major, channels-last): W[l, k, in, out]
        'conv_w_a': jax.random.normal(ks[1], (L, K, H, H), jnp.float32) * 0.05,
        'conv_w_b': jax.random.normal(ks[2], (L, K, H, H), jnp.float32) * 0.05,
        'conv_b_a': jnp.zeros((L, H), jnp.float32),
        'conv_b_b': jnp.zeros((L, H), jnp.float32),
        # proj = nn.Conv1d(H, 2C, 1): split into m / logs halves.
        'proj_w_m': jax.random.normal(ks[3], (H, C), jnp.float32) * 0.05,
        'proj_w_s': jax.random.normal(ks[4], (H, C), jnp.float32) * 0.05,
        'proj_b_m': jnp.zeros((1, C), jnp.float32),
        'proj_b_s': jnp.zeros((1, C), jnp.float32),
    }


# ----------------------------------------------------------------------------
# Plain-JAX f32 reference (mirrors the PyTorch module as literally written)
# ----------------------------------------------------------------------------
def _reference_forward(tokens, x_lengths, params, *, hidden_channels, out_channels):
    H = hidden_channels
    L, K = params['conv_w_a'].shape[:2]
    pad = (K - 1) // 2
    B, T = tokens.shape
    x = jnp.take(params['emb_w'], tokens, axis=0) * math.sqrt(H)
    mask = (jnp.arange(T)[None, :] < x_lengths[:, None]).astype(jnp.float32)
    x = x * mask[:, :, None]
    for l in range(L):
        xp = jnp.pad(x, ((0, 0), (pad, pad), (0, 0)))
        a = jnp.zeros((B, T, H), jnp.float32) + params['conv_b_a'][l]
        g = jnp.zeros((B, T, H), jnp.float32) + params['conv_b_b'][l]
        for k in range(K):
            xk = xp[:, k:k + T, :]
            a = a + jnp.einsum('bth,hc->btc', xk, params['conv_w_a'][l, k])
            g = g + jnp.einsum('bth,hc->btc', xk, params['conv_w_b'][l, k])
        x = jnp.tanh(a) * jax.nn.sigmoid(g)
    m = jnp.einsum('bth,hc->btc', x, params['proj_w_m']) + params['proj_b_m']
    s = jnp.einsum('bth,hc->btc', x, params['proj_w_s']) + params['proj_b_s']
    m = m * mask[:, :, None]
    s = s * mask[:, :, None]
    return (jnp.transpose(x, (0, 2, 1)), jnp.transpose(m, (0, 2, 1)),
            jnp.transpose(s, (0, 2, 1)), mask[:, None, :])


if __name__ == "__main__":
    n_vocab = 50
    linguistic_feature_dim = 0      # -> nn.Embedding branch
    hidden_channels = 32
    out_channels = 8
    n_layers = 2
    kernel_size = 3
    p_dropout = 0.1                 # eval-mode identity

    B, T = 2, 16
    key = jax.random.PRNGKey(0)
    k_tok, k_par = jax.random.split(key)

    tokens = jax.random.randint(k_tok, (B, T), 0, n_vocab, dtype=jnp.int32)
    x_lengths = jnp.array([16, 11], dtype=jnp.int32)

    params = init_params(k_par, n_vocab=n_vocab, hidden_channels=hidden_channels,
                         out_channels=out_channels, n_layers=n_layers,
                         kernel_size=kernel_size)

    x_out, m_out, logs_out, x_mask = conv_text_encoder(
        tokens, x_lengths, params,
        hidden_channels=hidden_channels, out_channels=out_channels,
        mask_inside_encoder=False)
    jax.block_until_ready((x_out, m_out, logs_out, x_mask))

    assert x_out.shape == (B, hidden_channels, T)
    assert m_out.shape == (B, out_channels, T)
    assert logs_out.shape == (B, out_channels, T)
    assert x_mask.shape == (B, 1, T)

    # Numerical check vs. plain-JAX f32 reference (bf16 MXU tolerance):
    # absolute error plus a scale-relative error so a systematic shift cannot
    # hide behind small magnitudes.
    r_x, r_m, r_s, r_mask = _reference_forward(
        tokens, x_lengths, params,
        hidden_channels=hidden_channels, out_channels=out_channels)
    for got, want in ((x_out, r_x), (m_out, r_m), (logs_out, r_s)):
        err = float(jnp.max(jnp.abs(got - want)))
        scale = float(jnp.max(jnp.abs(want))) + 1e-6
        assert err < 5e-2, f"max abs err {err}"
        assert err / scale < 2e-1, f"relative err {err / scale}"
    assert float(jnp.max(jnp.abs(x_mask - r_mask))) == 0.0

    print("KERNEL_OK")
</pallas_src>

<mosaic_0001>
module attributes {stable_mosaic.version = 11 : i64} {
  func.func @_encoder_kernel(%arg0: i32, %arg1: i32, %arg2: memref<2xi32, #tpu.memory_space<smem>>, %arg3: memref<1x32x128xbf16, #tpu.memory_space<vmem>>, %arg4: memref<1x1x32x4xbf16, #tpu.memory_space<vmem>>, %arg5: memref<2x3x64x32xbf16, #tpu.memory_space<vmem>>, %arg6: memref<2x64x1xf32, #tpu.memory_space<vmem>>, %arg7: memref<16x32xbf16, #tpu.memory_space<vmem>>, %arg8: memref<16x1xf32, #tpu.memory_space<vmem>>, %arg9: memref<1x32x128xf32, #tpu.memory_space<vmem>>, %arg10: memref<1x8x128xf32, #tpu.memory_space<vmem>>, %arg11: memref<1x8x128xf32, #tpu.memory_space<vmem>>) attributes {dimension_semantics = [#tpu.dimension_semantics<parallel>, #tpu.dimension_semantics<parallel>], iteration_bounds = array<i64: 2, 1>, scalar_prefetch = 1 : i64, scratch_operands = 0 : i64, tpu.core_type = #tpu.core_type<tc>, window_params = [{transform_indices = @transform_0, window_bounds = array<i64: 1, 32, 128>}, {transform_indices = @transform_1, window_bounds = array<i64: 1, 1, 32, 4>}, {pipeline_mode = #tpu.pipeline_mode<synchronous>, transform_indices = @transform_2, window_bounds = array<i64: 2, 3, 64, 32>}, {pipeline_mode = #tpu.pipeline_mode<synchronous>, transform_indices = @transform_3, window_bounds = array<i64: 2, 64, 1>}, {pipeline_mode = #tpu.pipeline_mode<synchronous>, transform_indices = @transform_4, window_bounds = array<i64: 16, 32>}, {pipeline_mode = #tpu.pipeline_mode<synchronous>, transform_indices = @transform_5, window_bounds = array<i64: 16, 1>}, {transform_indices = @transform_6, window_bounds = array<i64: 1, 32, 128>}, {transform_indices = @transform_7, window_bounds = array<i64: 1, 8, 128>}, {transform_indices = @transform_8, window_bounds = array<i64: 1, 8, 128>}]} {
    %c128_i32 = arith.constant 128 : i32
    %0 = arith.muli %arg1, %c128_i32 : i32
    %1 = arith.index_cast %arg0 : i32 to index
    %2 = memref.load %arg2[%1] : memref<2xi32, #tpu.memory_space<smem>>
    %c0 = arith.constant 0 : index
    %c0_0 = arith.constant 0 : index
    %c0_1 = arith.constant 0 : index
    %c0_2 = arith.constant 0 : index
    %3 = vector.load %arg4[%c0, %c0_0, %c0_1, %c0_2] : memref<1x1x32x4xbf16, #tpu.memory_space<vmem>>, vector<1x1x32x4xbf16>
    %4 = vector.shape_cast %3 : vector<1x1x32x4xbf16> to vector<32x4xbf16>
    %5 = vector.extract_strided_slice %4 {offsets = [0, 0], sizes = [32, 2], strides = [1, 1]} : vector<32x4xbf16> to vector<32x2xbf16>
    %c0_3 = arith.constant 0 : index
    %c0_4 = arith.constant 0 : index
    %c0_5 = arith.constant 0 : index
    %6 = vector.load %arg3[%c0_3, %c0_4, %c0_5] : memref<1x32x128xbf16, #tpu.memory_space<vmem>>, vector<1x32x128xbf16>
    %7 = vector.shape_cast %6 : vector<1x32x128xbf16> to vector<32x128xbf16>
    %8 = vector.extract_strided_slice %4 {offsets = [0, 2], sizes = [32, 2], strides = [1, 1]} : vector<32x4xbf16> to vector<32x2xbf16>
    %9 = tpu.concatenate %5, %7, %8 in 1 : vector<32x2xbf16>, vector<32x128xbf16>, vector<32x2xbf16> -> vector<32x132xbf16>
    %c0_6 = arith.constant 0 : index
    %c0_7 = arith.constant 0 : index
    %c0_8 = arith.constant 0 : index
    %c0_9 = arith.constant 0 : index
    %10 = vector.load %arg5[%c0_6, %c0_7, %c0_8, %c0_9] : memref<2x3x64x32xbf16, #tpu.memory_space<vmem>>, vector<1x1x64x32xbf16>
    %11 = vector.shape_cast %10 : vector<1x1x64x32xbf16> to vector<64x32xbf16>
    %12 = vector.extract_strided_slice %9 {offsets = [0, 0], sizes = [32, 130], strides = [1, 1]} : vector<32x132xbf16> to vector<32x130xbf16>
    %cst = arith.constant dense<0.000000e+00> : vector<64x130xf32>
    %13 = tpu.matmul %11, %12, %cst {dimension_numbers = #tpu.dot_dimension_numbers<[1], [0], [0], [1], [0, 0, 1, 1], [], []>} : vector<64x32xbf16>, vector<32x130xbf16>, vector<64x130xf32> -> vector<64x130xf32>
    %c0_10 = arith.constant 0 : index
    %c1 = arith.constant 1 : index
    %c0_11 = arith.constant 0 : index
    %c0_12 = arith.constant 0 : index
    %14 = vector.load %arg5[%c0_10, %c1, %c0_11, %c0_12] : memref<2x3x64x32xbf16, #tpu.memory_space<vmem>>, vector<1x1x64x32xbf16>
    %15 = vector.shape_cast %14 : vector<1x1x64x32xbf16> to vector<64x32xbf16>
    %16 = vector.extract_strided_slice %9 {offsets = [0, 1], sizes = [32, 130], strides = [1, 1]} : vector<32x132xbf16> to vector<32x130xbf16>
    %cst_13 = arith.constant dense<0.000000e+00> : vector<64x130xf32>
    %17 = tpu.matmul %15, %16, %cst_13 {dimension_numbers = #tpu.dot_dimension_numbers<[1], [0], [0], [1], [0, 0, 1, 1], [], []>} : vector<64x32xbf16>, vector<32x130xbf16>, vector<64x130xf32> -> vector<64x130xf32>
    %18 = arith.addf %13, %17 : vector<64x130xf32>
    %c0_14 = arith.constant 0 : index
    %c2 = arith.constant 2 : index
    %c0_15 = arith.constant 0 : index
    %c0_16 = arith.constant 0 : index
    %19 = vector.load %arg5[%c0_14, %c2, %c0_15, %c0_16] : memref<2x3x64x32xbf16, #tpu.memory_space<vmem>>, vector<1x1x64x32xbf16>
    %20 = vector.shape_cast %19 : vector<1x1x64x32xbf16> to vector<64x32xbf16>
    %21 = vector.extract_strided_slice %9 {offsets = [0, 2], sizes = [32, 130], strides = [1, 1]} : vector<32x132xbf16> to vector<32x130xbf16>
    %cst_17 = arith.constant dense<0.000000e+00> : vector<64x130xf32>
    %22 = tpu.matmul %20, %21, %cst_17 {dimension_numbers = #tpu.dot_dimension_numbers<[1], [0], [0], [1], [0, 0, 1, 1], [], []>} : vector<64x32xbf16>, vector<32x130xbf16>, vector<64x130xf32> -> vector<64x130xf32>
    %23 = arith.addf %18, %22 : vector<64x130xf32>
    %c0_18 = arith.constant 0 : index
    %c0_19 = arith.constant 0 : index
    %c0_20 = arith.constant 0 : index
    %24 = vector.load %arg6[%c0_18, %c0_19, %c0_20] : memref<2x64x1xf32, #tpu.memory_space<vmem>>, vector<1x64x1xf32>
    %25 = vector.shape_cast %24 : vector<1x64x1xf32> to vector<64x1xf32>
    %26 = vector.broadcast %25 : vector<64x1xf32> to vector<64x130xf32>
    %27 = arith.addf %23, %26 : vector<64x130xf32>
    %28 = vector.extract_strided_slice %27 {offsets = [0, 0], sizes = [32, 130], strides = [1, 1]} : vector<64x130xf32> to vector<32x130xf32>
    %29 = math.tanh %28 : vector<32x130xf32>
    %30 = vector.extract_strided_slice %27 {offsets = [32, 0], sizes = [32, 130], strides = [1, 1]} : vector<64x130xf32> to vector<32x130xf32>
    %31 = arith.negf %30 : vector<32x130xf32>
    %32 = math.exp %31 : vector<32x130xf32>
    %cst_21 = arith.constant 1.000000e+00 : f32
    %33 = vector.broadcast %cst_21 : f32 to vector<32x130xf32>
    %34 = arith.addf %33, %32 : vector<32x130xf32>
    %35 = arith.divf %33, %34 : vector<32x130xf32>
    %36 = arith.mulf %29, %35 : vector<32x130xf32>
    %c1_i32 = arith.constant 1 : i32
    %37 = arith.subi %0, %c1_i32 : i32
    %38 = tpu.iota {dimensions = array<i32: 1>} : vector<1x130xi32>
    %39 = vector.broadcast %37 : i32 to vector<1x130xi32>
    %40 = arith.addi %39, %38 : vector<1x130xi32>
    %c0_i32 = arith.constant 0 : i32
    %41 = vector.broadcast %c0_i32 : i32 to vector<1x130xi32>
    %42 = arith.cmpi sge, %40, %41 : vector<1x130xi32>
    %c16_i32 = arith.constant 16 : i32
    %43 = vector.broadcast %c16_i32 : i32 to vector<1x130xi32>
    %44 = arith.cmpi slt, %40, %43 : vector<1x130xi32>
    %45 = arith.andi %42, %44 : vector<1x130xi1>
    %cst_22 = arith.constant 0.000000e+00 : f32
    %46 = vector.shape_cast %45 : vector<1x130xi1> to vector<1x130xi1>
    %47 = vector.broadcast %46 : vector<1x130xi1> to vector<32x130xi1>
    %48 = vector.broadcast %cst_22 : f32 to vector<32x130xf32>
    %49 = arith.select %47, %36, %48 : vector<32x130xi1>, vector<32x130xf32>
    %50 = arith.truncf %49 : vector<32x130xf32> to vector<32x130xbf16>
    %c1_23 = arith.constant 1 : index
    %c0_24 = arith.constant 0 : index
    %c0_25 = arith.constant 0 : index
    %c0_26 = arith.constant 0 : index
    %51 = vector.load %arg5[%c1_23, %c0_24, %c0_25, %c0_26] : memref<2x3x64x32xbf16, #tpu.memory_space<vmem>>, vector<1x1x64x32xbf16>
    %52 = vector.shape_cast %51 : vector<1x1x64x32xbf16> to vector<64x32xbf16>
    %53 = vector.extract_strided_slice %50 {offsets = [0, 0], sizes = [32, 128], strides = [1, 1]} : vector<32x130xbf16> to vector<32x128xbf16>
    %cst_27 = arith.constant dense<0.000000e+00> : vector<64x128xf32>
    %54 = tpu.matmul %52, %53, %cst_27 {dimension_numbers = #tpu.dot_dimension_numbers<[1], [0], [0], [1], [0, 0, 1, 1], [], []>} : vector<64x32xbf16>, vector<32x128xbf16>, vector<64x128xf32> -> vector<64x128xf32>
    %c1_28 = arith.constant 1 : index
    %c1_29 = arith.constant 1 : index
    %c0_30 = arith.constant 0 : index
    %c0_31 = arith.constant 0 : index
    %55 = vector.load %arg5[%c1_28, %c1_29, %c0_30, %c0_31] : memref<2x3x64x32xbf16, #tpu.memory_space<vmem>>, vector<1x1x64x32xbf16>
    %56 = vector.shape_cast %55 : vector<1x1x64x32xbf16> to vector<64x32xbf16>
    %57 = vector.extract_strided_slice %50 {offsets = [0, 1], sizes = [32, 128], strides = [1, 1]} : vector<32x130xbf16> to vector<32x128xbf16>
    %cst_32 = arith.constant dense<0.000000e+00> : vector<64x128xf32>
    %58 = tpu.matmul %56, %57, %cst_32 {dimension_numbers = #tpu.dot_dimension_numbers<[1], [0], [0], [1], [0, 0, 1, 1], [], []>} : vector<64x32xbf16>, vector<32x128xbf16>, vector<64x128xf32> -> vector<64x128xf32>
    %59 = arith.addf %54, %58 : vector<64x128xf32>
    %c1_33 = arith.constant 1 : index
    %c2_34 = arith.constant 2 : index
    %c0_35 = arith.constant 0 : index
    %c0_36 = arith.constant 0 : index
    %60 = vector.load %arg5[%c1_33, %c2_34, %c0_35, %c0_36] : memref<2x3x64x32xbf16, #tpu.memory_space<vmem>>, vector<1x1x64x32xbf16>
    %61 = vector.shape_cast %60 : vector<1x1x64x32xbf16> to vector<64x32xbf16>
    %62 = vector.extract_strided_slice %50 {offsets = [0, 2], sizes = [32, 128], strides = [1, 1]} : vector<32x130xbf16> to vector<32x128xbf16>
    %cst_37 = arith.constant dense<0.000000e+00> : vector<64x128xf32>
    %63 = tpu.matmul %61, %62, %cst_37 {dimension_numbers = #tpu.dot_dimension_numbers<[1], [0], [0], [1], [0, 0, 1, 1], [], []>} : vector<64x32xbf16>, vector<32x128xbf16>, vector<64x128xf32> -> vector<64x128xf32>
    %64 = arith.addf %59, %63 : vector<64x128xf32>
    %c1_38 = arith.constant 1 : index
    %c0_39 = arith.constant 0 : index
    %c0_40 = arith.constant 0 : index
    %65 = vector.load %arg6[%c1_38, %c0_39, %c0_40] : memref<2x64x1xf32, #tpu.memory_space<vmem>>, vector<1x64x1xf32>
    %66 = vector.shape_cast %65 : vector<1x64x1xf32> to vector<64x1xf32>
    %67 = vector.broadcast %66 : vector<64x1xf32> to vector<64x128xf32>
    %68 = arith.addf %64, %67 : vector<64x128xf32>
    %69 = vector.extract_strided_slice %68 {offsets = [0, 0], sizes = [32, 128], strides = [1, 1]} : vector<64x128xf32> to vector<32x128xf32>
    %70 = math.tanh %69 : vector<32x128xf32>
    %71 = vector.extract_strided_slice %68 {offsets = [32, 0], sizes = [32, 128], strides = [1, 1]} : vector<64x128xf32> to vector<32x128xf32>
    %72 = arith.negf %71 : vector<32x128xf32>
    %73 = math.exp %72 : vector<32x128xf32>
    %cst_41 = arith.constant 1.000000e+00 : f32
    %74 = vector.broadcast %cst_41 : f32 to vector<32x128xf32>
    %75 = arith.addf %74, %73 : vector<32x128xf32>
    %76 = arith.divf %74, %75 : vector<32x128xf32>
    %77 = arith.mulf %70, %76 : vector<32x128xf32>
    %c0_i32_42 = arith.constant 0 : i32
    %78 = arith.subi %0, %c0_i32_42 : i32
    %79 = tpu.iota {dimensions = array<i32: 1>} : vector<1x128xi32>
    %80 = vector.broadcast %78 : i32 to vector<1x128xi32>
    %81 = arith.addi %80, %79 : vector<1x128xi32>
    %c0_i32_43 = arith.constant 0 : i32
    %82 = vector.broadcast %c0_i32_43 : i32 to vector<1x128xi32>
    %83 = arith.cmpi sge, %81, %82 : vector<1x128xi32>
    %c16_i32_44 = arith.constant 16 : i32
    %84 = vector.broadcast %c16_i32_44 : i32 to vector<1x128xi32>
    %85 = arith.cmpi slt, %81, %84 : vector<1x128xi32>
    %86 = arith.andi %83, %85 : vector<1x128xi1>
    %cst_45 = arith.constant 0.000000e+00 : f32
    %87 = vector.shape_cast %86 : vector<1x128xi1> to vector<1x128xi1>
    %88 = vector.broadcast %87 : vector<1x128xi1> to vector<32x128xi1>
    %89 = vector.broadcast %cst_45 : f32 to vector<32x128xf32>
    %90 = arith.select %88, %77, %89 : vector<32x128xi1>, vector<32x128xf32>
    %c0_46 = arith.constant 0 : index
    %c0_47 = arith.constant 0 : index
    %c0_48 = arith.constant 0 : index
    %91 = vector.load %arg9[%c0_46, %c0_47, %c0_48] : memref<1x32x128xf32, #tpu.memory_space<vmem>>, vector<1x32x128xf32>
    %92 = vector.shape_cast %91 : vector<1x32x128xf32> to vector<32x128xf32>
    %93 = vector.shape_cast %90 : vector<32x128xf32> to vector<1x32x128xf32>
    tpu.vector_store %arg9[%c0_46, %c0_47, %c0_48], %93 {strides = array<i32>} : memref<1x32x128xf32, #tpu.memory_space<vmem>>, vector<1x32x128xf32>,
    %c0_49 = arith.constant 0 : index
    %c0_50 = arith.constant 0 : index
    %94 = vector.load %arg7[%c0_49, %c0_50] : memref<16x32xbf16, #tpu.memory_space<vmem>>, vector<16x32xbf16>
    %95 = arith.truncf %90 : vector<32x128xf32> to vector<32x128xbf16>
    %cst_51 = arith.constant dense<0.000000e+00> : vector<16x128xf32>
    %96 = tpu.matmul %94, %95, %cst_51 {dimension_numbers = #tpu.dot_dimension_numbers<[1], [0], [0], [1], [0, 0, 1, 1], [], []>} : vector<16x32xbf16>, vector<32x128xbf16>, vector<16x128xf32> -> vector<16x128xf32>
    %c0_52 = arith.constant 0 : index
    %c0_53 = arith.constant 0 : index
    %97 = vector.load %arg8[%c0_52, %c0_53] : memref<16x1xf32, #tpu.memory_space<vmem>>, vector<16x1xf32>
    %98 = vector.broadcast %97 : vector<16x1xf32> to vector<16x128xf32>
    %99 = arith.addf %96, %98 : vector<16x128xf32>
    %100 = tpu.iota {dimensions = array<i32: 1>} : vector<1x128xi32>
    %101 = vector.broadcast %0 : i32 to vector<1x128xi32>
    %102 = arith.addi %101, %100 : vector<1x128xi32>
    %103 = vector.broadcast %2 : i32 to vector<1x128xi32>
    %104 = arith.cmpi slt, %102, %103 : vector<1x128xi32>
    %cst_54 = arith.constant 0.000000e+00 : f32
    %105 = vector.shape_cast %104 : vector<1x128xi1> to vector<1x128xi1>
    %106 = vector.broadcast %105 : vector<1x128xi1> to vector<16x128xi1>
    %107 = vector.broadcast %cst_54 : f32 to vector<16x128xf32>
    %108 = arith.select %106, %99, %107 : vector<16x128xi1>, vector<16x128xf32>
    %109 = vector.extract_strided_slice %108 {offsets = [0, 0], sizes = [8, 128], strides = [1, 1]} : vector<16x128xf32> to vector<8x128xf32>
    %c0_55 = arith.constant 0 : index
    %c0_56 = arith.constant 0 : index
    %c0_57 = arith.constant 0 : index
    %110 = vector.load %arg10[%c0_55, %c0_56, %c0_57] : memref<1x8x128xf32, #tpu.memory_space<vmem>>, vector<1x8x128xf32>
    %111 = vector.shape_cast %110 : vector<1x8x128xf32> to vector<8x128xf32>
    %112 = vector.shape_cast %109 : vector<8x128xf32> to vector<1x8x128xf32>
    tpu.vector_store %arg10[%c0_55, %c0_56, %c0_57], %112 {strides = array<i32>} : memref<1x8x128xf32, #tpu.memory_space<vmem>>, vector<1x8x128xf32>,
    %113 = vector.extract_strided_slice %108 {offsets = [8, 0], sizes = [8, 128], strides = [1, 1]} : vector<16x128xf32> to vector<8x128xf32>
    %c0_58 = arith.constant 0 : index
    %c0_59 = arith.constant 0 : index
    %c0_60 = arith.constant 0 : index
    %114 = vector.load %arg11[%c0_58, %c0_59, %c0_60] : memref<1x8x128xf32, #tpu.memory_space<vmem>>, vector<1x8x128xf32>
    %115 = vector.shape_cast %114 : vector<1x8x128xf32> to vector<8x128xf32>
    %116 = vector.shape_cast %113 : vector<8x128xf32> to vector<1x8x128xf32>
    tpu.vector_store %arg11[%c0_58, %c0_59, %c0_60], %116 {strides = array<i32>} : memref<1x8x128xf32, #tpu.memory_space<vmem>>, vector<1x8x128xf32>,
    return
  }
  func.func @transform_0(%arg0: i32, %arg1: i32, %arg2: memref<2xi32, #tpu.memory_space<smem>>) -> (i32, i32, i32) {
    %c0_i32 = arith.constant 0 : i32
    %c0_i32_0 = arith.constant 0 : i32
    return %arg0, %c0_i32, %arg1 : i32, i32, i32
  }
  func.func @transform_1(%arg0: i32, %arg1: i32, %arg2: memref<2xi32, #tpu.memory_space<smem>>) -> (i32, i32, i32, i32) {
    %c0_i32 = arith.constant 0 : i32
    %c0_i32_0 = arith.constant 0 : i32
    %c0_i32_1 = arith.constant 0 : i32
    return %arg0, %arg1, %c0_i32, %c0_i32_0 : i32, i32, i32, i32
  }
  func.func @transform_2(%arg0: i32, %arg1: i32, %arg2: memref<2xi32, #tpu.memory_space<smem>>) -> (i32, i32, i32, i32) {
    %c0_i32 = arith.constant 0 : i32
    %c0_i32_0 = arith.constant 0 : i32
    %c0_i32_1 = arith.constant 0 : i32
    %c0_i32_2 = arith.constant 0 : i32
    %c0_i32_3 = arith.constant 0 : i32
    return %c0_i32, %c0_i32_0, %c0_i32_1, %c0_i32_2 : i32, i32, i32, i32
  }
  func.func @transform_3(%arg0: i32, %arg1: i32, %arg2: memref<2xi32, #tpu.memory_space<smem>>) -> (i32, i32, i32) {
    %c0_i32 = arith.constant 0 : i32
    %c0_i32_0 = arith.constant 0 : i32
    %c0_i32_1 = arith.constant 0 : i32
    %c0_i32_2 = arith.constant 0 : i32
    return %c0_i32, %c0_i32_0, %c0_i32_1 : i32, i32, i32
  }
  func.func @transform_4(%arg0: i32, %arg1: i32, %arg2: memref<2xi32, #tpu.memory_space<smem>>) -> (i32, i32) {
    %c0_i32 = arith.constant 0 : i32
    %c0_i32_0 = arith.constant 0 : i32
    %c0_i32_1 = arith.constant 0 : i32
    return %c0_i32, %c0_i32_0 : i32, i32
  }
  func.func @transform_5(%arg0: i32, %arg1: i32, %arg2: memref<2xi32, #tpu.memory_space<smem>>) -> (i32, i32) {
    %c0_i32 = arith.constant 0 : i32
    %c0_i32_0 = arith.constant 0 : i32
    %c0_i32_1 = arith.constant 0 : i32
    return %c0_i32, %c0_i32_0 : i32, i32
  }
  func.func @transform_6(%arg0: i32, %arg1: i32, %arg2: memref<2xi32, #tpu.memory_space<smem>>) -> (i32, i32, i32) {
    %c0_i32 = arith.constant 0 : i32
    %c0_i32_0 = arith.constant 0 : i32
    return %arg0, %c0_i32, %arg1 : i32, i32, i32
  }
  func.func @transform_7(%arg0: i32, %arg1: i32, %arg2: memref<2xi32, #tpu.memory_space<smem>>) -> (i32, i32, i32) {
    %c0_i32 = arith.constant 0 : i32
    %c0_i32_0 = arith.constant 0 : i32
    return %arg0, %c0_i32, %arg1 : i32, i32, i32
  }
  func.func @transform_8(%arg0: i32, %arg1: i32, %arg2: memref<2xi32, #tpu.memory_space<smem>>) -> (i32, i32, i32) {
    %c0_i32 = arith.constant 0 : i32
    %c0_i32_0 = arith.constant 0 : i32
    return %arg0, %c0_i32, %arg1 : i32, i32, i32
  }
}

</mosaic_0001>

<bundles_post_ra>
// kernel: conv_text_encoder.1
= control target key start
LH: loop header
LB: loop body
LE: loop exit
PB: predicated region body
PF: predicated region fallthrough
CT: control target
= control target key end

     0   :  { %s2252_s12 = smov [#allocation3]   ;;  %s2732_s0 = inlined_call_operand.vmem [shape: s32[2], index: 0, kind: input, shape index: {}]   ;;  %s2733_s1 = inlined_call_operand.vmem [shape: bf16[2,32,128], index: 1, kind: input, shape index: {}]   ;;  %s2734_s2 = inlined_call_operand.vmem [shape: bf16[2,1,32,4], index: 2, kind: input, shape index: {}]   ;;  %s2735_s3 = inlined_call_operand.vmem [shape: bf16[2,3,64,32], index: 3, kind: input, shape index: {}]   ;;  %s2736_s4 = inlined_call_operand.vmem [shape: f32[2,64,1], index: 4, kind: input, shape index: {}]   ;;  %s2737_s5 = inlined_call_operand.vmem [shape: bf16[16,32], index: 5, kind: input, shape index: {}]   ;;  %s2738_s6 = inlined_call_operand.vmem [shape: f32[16,1], index: 6, kind: input, shape index: {}]   ;;  %s2739_s7 = inlined_call_operand.vmem [shape: f32[2,32,128], index: 7, kind: output, shape index: {0}]   ;;  %s2740_s8 = inlined_call_operand.hbm [shape: f32[2,8,128], index: 8, kind: output, shape index: {1}]   ;;  %s2741_s9 = inlined_call_operand.hbm [shape: f32[2,8,128], index: 9, kind: output, shape index: {2}]  }
   0x1   :  { %2745 = sst [smem:[#allocation11_spill]] %s2733_s1  ;;  %s16_s11 = sshll.u32 %s2732_s0, 4  ;;  %s17_s11 = int_to_ptr.vmem [resolvable:$true] %s16_s11 }
   0x2   :  { %2746 = sst [smem:[#allocation12_spill]] %s2734_s2 }
   0x3   :  { %2747 = sst [smem:[#allocation13_spill]] %s2735_s3 }
   0x4   :  { %19 = dma.vmem_to_smem %s17_s11, 16, %s2252_s12, [#allocation2] }
   0x5   :  { %2218 = dma.done.wait [#allocation2], 16 }
   0x6   :  { %2219 = vsyncadd [#allocation2], 4294967280 }
   0x7   :  { %22 = sfence }
   0x8   :  { %23 = vsyncpa [#allocation5], 0 }
   0x9   :  { %25 = vsyncpa [#allocation5 + $0x1], 0 }
   0xa   :  { %26 = vsyncpa [#allocation7], 0 }
   0xb   :  { %28 = vsyncpa [#allocation7 + $0x1], 0  ;;  %s2310_s13 = smov 0   ;;  %s2312_s14 = smov 0  }
   0xc   :  { %s2314_s15 = smov 0   ;;  %s2316_s16 = smov 0  }
   0xd   :  { %s2318_s17 = smov 0   ;;  %s2320_s0 = smov 0  }
   0xe LB: > { %s1736_s18 = sadd.s32 4294967295, %s2250_s0   ;;  %s1737_s19 = sadd.s32 4294967294, %s2250_s0   ;;  %s2250_s0 = sphi %s2320_s0, %s34_s0   ;;  %s2246_s17 = sphi %s2318_s17, %s2763_s17   ;;  %s2242_s16 = sphi %s2316_s16, %s2762_s16   ;;  %s2238_s15 = sphi %s2314_s15, %s2761_s15   ;;  %s2234_s14 = sphi %s2312_s14, %s2760_s14   ;;  %s2230_s13 = sphi %s2310_s13, %s2759_s13  }
   0xf   : > { %s46_s20 = sadd.s32 1, %s2246_s17  ;;  %s223_s21 = sadd.s32 1, %s2238_s15 }
  0x10   : > { %p48_p0 = scmp.ge.s32.totalorder %s46_s20, 2  ;;  %p233_p1 = scmp.ne.s32.totalorder %s2238_s15, %s2234_s14 }
  0x11   : > { %p234_p2 = scmp.eq.s32.totalorder %s1736_s18, 1  ;;  %p239_p3 = scmp.ne.s32.totalorder %s2234_s14, %s2230_s13 }
  0x12   : > { %s2765_s20 = smov (%p48_p0, %s46_s20), 0  ;;  %p240_p5 = scmp.eq.s32.totalorder %s1737_s19, 1 }
  0x13   : > { %p2350_p4 = por %p234_p2, %p233_p1  ;;  %s218_s23 = ssub.s32 %s2246_s17, %s2765_s20 }
  0x14   : > { %p1740_p6 = scmp.ge.s32.totalorder %s2250_s0, 1  ;;  %p221_p7 = scmp.eq.s32.totalorder %s218_s23, 0 }
  0x15   : > { %p2357_p8 = por %p240_p5, %p239_p3  ;;  %p321_p9 = scmp.lt.s32.totalorder %s2250_s0, 3 }
  0x16   : > { %s2363_s25 = scalar_select %p221_p7, %s2238_s15, %s223_s21  }
  0x17   : > { %p322_p10 = pnand %p1740_p6, %p321_p9 }
  0x18   : > { %p380_p11 = scmp.lt.s32.totalorder (!%p322_p10), %s2242_s16, 1  ;;  %s2750_s1 = sld [smem:[#allocation11_spill]] (!%p322_p10) }
  0x19   : > { %325 = sbr.rel (%p322_p10) target bundleno = 1051 (0x41b), region = 44  ;;  %s2253_s10 = smov (!%p322_p10), 2  }
  0x1a   : > { %s2751_s2 = sld [smem:[#allocation12_spill]] (!%p322_p10)  ;;  %s2254_s19 = smov (!%p322_p10), 127  }
  0x1b   : > { %s2742_s21 = smov (!%p322_p10), 126   ;;  %s2752_s3 = sld [smem:[#allocation13_spill]] (!%p322_p10) }
  0x1c   : > { %s2755_s28 = smov (!%p322_p10), 126   ;;  %s407_s12 = sld [smem:[#allocation3 + %s2242_s16]] (!%p322_p10) }
  0x1d   : > { %s1970_s23 = sshll.u32 (!%p322_p10), %s2242_s16, 3 }
  0x1e   : > { %s2367_s26 = scalar_select %p380_p11, %s2242_s16, 1  ;;  %vm440_vm0 = vcmask 15360   ;;  %vm502_vm1 = vcmask 1039360   ;;  %vm509_vm2 = vcmask 261120   ;;  %vm707_vm3 = vcmask 1031168   ;;  %v804_v26 = vld [vmem:[%s2736_s4 + $0x20] sm:$0xff] }
  0x1f   : > { %v2256_v27 = vmov 0   ;;  %v806_v28 = vld [vmem:[%s2736_s4 + $0x30] sm:$0xff]  ;;  %v807_v29 = vld [vmem:[%s2736_s4 + $0x38] sm:$0xff]  ;;  %v801_v30 = vld [vmem:[%s2736_s4 + $0x8] sm:$0xff]  ;;  %s1566_s11 = scalar_lea.hbm %s2741_s9, %s1970_s23 }
  0x20   : > { %s1974_s27 = sshll.u32 %s2367_s26, 4  ;;  %2077 = vset.pattern.permute.xlu0 %v2256_v27  ;;  %2076 = vset.pattern.permute.xlu2 %v2256_v27  ;;  %v805_v33 = vld [vmem:[%s2736_s4 + $0x28] sm:$0xff]  ;;  %v802_v34 = vld [vmem:[%s2736_s4 + $0x10] sm:$0xff]  ;;  %v803_v36 = vld [vmem:[%s2736_s4 + $0x18] sm:$0xff] }
  0x21   : > { %s387_s30 = scalar_lea.vmem %s2750_s1, %s1974_s27  ;;  %s396_s18 = scalar_lea.vmem %s2751_s2, %s1974_s27  ;;  %v1986_v17 = vld [vmem:[%s2752_s3 + $0x28] sm:$0xff]  ;;  %v1985_v18 = vld [vmem:[%s2752_s3 + $0x20] sm:$0xff]  ;;  %v1987_v24 = vld [vmem:[%s2752_s3 + $0x30] sm:$0xff]  ;;  %2075 = vset.pattern.permute.xlu1 %v2256_v27 }
  0x22   : > { %v1980_v0 = vld [vmem:[%s387_s30 + $0x8] sm:$0xff]  ;;  %v1979_v1 = vld [vmem:[%s387_s30] sm:$0xff]  ;;  %v1988_v35 = vld [vmem:[%s2752_s3 + $0x38] sm:$0xff]  ;;  %s2158_s1 = scalar_lea.hbm %s2740_s8, 16 }
  0x23   : > { %438 = vrot.lane.b32.xlu0 %v1980_v0, %s2253_s10  ;;  %v1978_v2 = vld [vmem:[%s396_s18 + $0x8] sm:$0xff]  ;;  %v1977_v5 = vld [vmem:[%s396_s18] sm:$0xff]  ;;  %v1991_v39 = vld [vmem:[%s2752_s3 + $0x50] sm:$0xff]  ;;  %s2665_s18 = sand.u32 1, %s2234_s14  }
  0x24   : > { %v1989_v25 = vld [vmem:[%s2752_s3 + $0x40] sm:$0xff]  ;;  %v1990_v32 = vld [vmem:[%s2752_s3 + $0x48] sm:$0xff]  ;;  %v1983_v40 = vld [vmem:[%s2752_s3 + $0x10] sm:$0xff]  ;;  %s2744_s27 = sshll.u32 %s2665_s18, 3 }
  0x25   : > { %v1981_v31 = vld [vmem:[%s2752_s3] sm:$0xff]  ;;  %v1982_v38 = vld [vmem:[%s2752_s3 + $0x8] sm:$0xff]  ;;  %v1992_v41 = vld [vmem:[%s2752_s3 + $0x58] sm:$0xff] }
  0x26   : > { %v800_v37 = vld [vmem:[%s2736_s4] sm:$0xff]  ;;  %v1984_v42 = vld [vmem:[%s2752_s3 + $0x18] sm:$0xff] }
  0x2b   : > { %436 = vrot.lane.b32.xlu0 %v1979_v1, %s2253_s10 }
  0x95   : > { %v439_v3 = vpop.permute.xlu0 %438 }
  0x96   : > { %v447_v4 = vsel %vm440_vm0, %v1978_v2, %v439_v3  ;;  %v451_v7 = vsel %vm440_vm0, %v439_v3, %v1978_v2 }
  0x97   : > { %498 = vrot.lane.b32.xlu1 %v447_v4, %s2254_s19  ;;  %703 = vrot.lane.b32.xlu0 %v447_v4, %s2742_s21 }
  0x9d   : > { %v437_v6 = vpop.permute.xlu0 %436 }
  0x9e   : > { %v449_v8 = vsel %vm440_vm0, %v437_v6, %v1977_v5  ;;  %v443_v9 = vsel %vm440_vm0, %v1977_v5, %v437_v6 }
  0x9f   : > { %500 = vrot.lane.b32.xlu1 %v451_v7, %s2254_s19  ;;  %701 = vrot.lane.b32.xlu0 %v449_v8, %s2742_s21 }
  0xa0   : > { %494 = vrot.lane.b32.xlu2 %v443_v9, %s2254_s19 }
  0xa7   : > { %705 = vrot.lane.b32.xlu1 %v451_v7, %s2742_s21  ;;  %830 = vperm.xlu0 %2077, %v804_v26  }
  0xa8   : > { %496 = vrot.lane.b32.xlu2 %v449_v8, %s2254_s19 }
  0xaf   : > { %840 = vperm.xlu1 %2075, %v806_v28   ;;  %815 = vperm.xlu0 %2077, %v801_v30  }
  0xb0   : > { %699 = vrot.lane.b32.xlu2 %v443_v9, %s2742_s21  ;;  %s1976_s21 = sshll.u32 %s2367_s26, 5 }
  0xb1   : > { %s2634_s10 = scalar_lea.vmem %s2739_s7, %s1976_s21  ;;  %s1551_s21 = scalar_lea.hbm %s2740_s8, %s1970_s23 }
  0xb7   : > { %835 = vperm.xlu1 %2075, %v805_v33  }
  0xb8   : > { %845 = vperm.xlu2 %2076, %v807_v29  }
  0xbf   : > { %825 = vperm.xlu1 %2075, %v803_v36  }
  0xc0   : > { %820 = vperm.xlu2 %2076, %v802_v34  }
  0xc8   : > { %810 = vperm.xlu2 %2076, %v800_v37  }
  0xfa   : > { %v495_v10 = vpop.permute.xlu2 %494 }
 0x102   : > { %v497_v15 = vpop.permute.xlu2 %496 }
 0x103   : > { %v503_v16 = vsel %vm502_vm1, %v495_v10, %v497_v15 }
 0x109   : > { %v499_v11 = vpop.permute.xlu1 %498  ;;  %v704_v12 = vpop.permute.xlu0 %703 }
 0x10a   : > { %v700_v22 = vpop.permute.xlu2 %699 }
 0x111   : > { %v501_v13 = vpop.permute.xlu1 %500  ;;  %v702_v21 = vpop.permute.xlu0 %701 }
 0x112   : > { %557 = vmatpush.bf16.msra.mxu1 %v501_v13  ;;  %v504_v14 = vsel %vm502_vm1, %v499_v11, %v501_v13  ;;  %v708_v23 = vsel %vm707_vm3, %v700_v22, %v702_v21  ;;  %v846_v11 = vpop.permute.xlu2 %845 }
 0x113   : > { %528 = vmatpush.bf16.msra.mxu0 %v504_v14  ;;  %2006 = vmatpush.bf16.msra.mxu2 %v504_v14 }
 0x114   : > { %2007 = vmatpush.bf16.msra.mxu3 %v504_v14 }
 0x116   : > { %558 = vmatpush.bf16.msra.mxu1 %v497_v15 }
 0x117   : > { %529 = vmatpush.bf16.msra.mxu0 %v503_v16  ;;  %2008 = vmatpush.bf16.msra.mxu2 %v503_v16 }
 0x118   : > { %2009 = vmatpush.bf16.msra.mxu3 %v503_v16 }
 0x119   : > { %v706_v19 = vpop.permute.xlu1 %705  ;;  %1793 = vmatmul.msk.bf16.vlgmr.msra.gmra.mxu1 %vm509_vm2, %v1985_v18  ;;  %v831_v13 = vpop.permute.xlu0 %830 }
 0x11a   : > { %1790 = vmatmul.msk.bf16.vlgmr.msra.gmra.mxu2 %vm509_vm2, %v1986_v17  ;;  %761 = vmatpush.bf16.msrb.mxu1 %v706_v19  ;;  %v709_v20 = vsel %vm707_vm3, %v704_v12, %v706_v19 }
 0x11b   : > { %618 = vmatpush.bf16.msrb.mxu2 %v447_v4  ;;  %732 = vmatpush.bf16.msrb.mxu0 %v709_v20 }
 0x11c   : > { %647 = vmatpush.bf16.msrb.mxu3 %v451_v7  ;;  %1789 = vmatmul.msk.bf16.vlgmr.msra.gmra.mxu0 %vm509_vm2, %v1985_v18 }
 0x11d   : > { %1792 = vmatmul.msk.bf16.vlgmr.msra.gmra.mxu3 %vm509_vm2, %v1988_v35 }
 0x11e   : > { %762 = vmatpush.bf16.msrb.mxu1 %v702_v21 }
 0x11f   : > { %619 = vmatpush.bf16.msrb.mxu2 %v443_v9  ;;  %733 = vmatpush.bf16.msrb.mxu0 %v708_v23  ;;  %v2486_v23 = vpop.permute.xlu2 %820 }
 0x120   : > { %648 = vmatpush.bf16.msrb.mxu3 %v449_v8 }
 0x121   : > { %v841_v10 = vpop.permute.xlu1 %840 }
 0x129   : > { %1794 = vmatmul.msk.bf16.gmra.mxu1 %vm509_vm2, %v1986_v17  ;;  %v836_v22 = vpop.permute.xlu1 %835 }
 0x12a   : > { %1791 = vmatmul.msk.bf16.gmra.mxu2 %vm509_vm2, %v1987_v24 }
 0x12c   : > { %1845 = vmatmul.msk.bf16.vlgmr.msrb.gmra.mxu0 %vm509_vm2, %v1989_v25 }
 0x12d   : > { %1817 = vmatmul.msk.bf16.vlgmr.msrb.gmra.mxu3 %vm509_vm2, %v1981_v31 }
 0x139   : > { %1795 = vmatmul.msk.bf16.gmra.mxu1 %vm509_vm2, %v1987_v24 }
 0x13a   : > { %1813 = vmatmul.msk.bf16.vlgmr.msrb.gmra.mxu2 %vm509_vm2, %v1981_v31 }
 0x13c   : > { %1846 = vmatmul.msk.bf16.gmra.mxu0 %vm509_vm2, %v1990_v32 }
 0x13d   : > { %1818 = vmatmul.msk.bf16.gmra.mxu3 %vm509_vm2, %v1982_v38 }
 0x149   : > { %1796 = vmatmul.msk.bf16.gmra.mxu1 %vm509_vm2, %v1988_v35 }
 0x14a   : > { %1814 = vmatmul.msk.bf16.gmra.mxu2 %vm509_vm2, %v1982_v38  ;;  %v811_v38 = vpop.permute.xlu2 %810 }
 0x14c   : > { %1847 = vmatmul.msk.bf16.gmra.mxu0 %vm509_vm2, %v1991_v39 }
 0x14d   : > { %1819 = vmatmul.msk.bf16.gmra.mxu3 %vm509_vm2, %v1983_v40 }
 0x159   : > { %1849 = vmatmul.msk.bf16.vlgmr.msrb.gmra.mxu1 %vm509_vm2, %v1989_v25 }
 0x15a   : > { %1815 = vmatmul.msk.bf16.gmra.mxu2 %vm509_vm2, %v1983_v40  ;;  %v1033_v40 = vlaneseq }
 0x15c   : > { %1848 = vmatmul.msk.bf16.gmra.mxu0 %vm509_vm2, %v1992_v41 }
 0x15d   : > { %1820 = vmatmul.msk.bf16.gmra.mxu3 %vm509_vm2, %v1984_v42 }
 0x169   : > { %1850 = vmatmul.msk.bf16.gmra.mxu1 %vm509_vm2, %v1990_v32 }
 0x16a   : > { %1816 = vmatmul.msk.bf16.gmra.mxu2 %vm509_vm2, %v1984_v42 }
 0x179   : > { %1851 = vmatmul.msk.bf16.gmra.mxu1 %vm509_vm2, %v1991_v39 }
 0x189   : > { %1852 = vmatmul.msk.bf16.gmra.mxu1 %vm509_vm2, %v1992_v41 }
 0x196   : > { %v560_v43 = vpop.f32.mrf.mxu1 }
 0x199   : > { %v531_v45 = vpop.f32.mrf.mxu0 }
 0x19d   : > { %v2472_v44 = vpop.f32.mrf.mxu2 }
 0x19e   : > { %v562_v46 = vpop.f32.mrf.mxu1 }
 0x1a0   : > { %v546_v60 = vpop.f32.mrf.mxu3 }
 0x1a1   : > { %v533_v49 = vpop.f32.mrf.mxu0 }
 0x1a5   : > { %v2474_v47 = vpop.f32.mrf.mxu2 }
 0x1a6   : > { %v565_v48 = vpop.f32.mrf.mxu1 }
 0x1a8   : > { %v548_v63 = vpop.f32.mrf.mxu3 }
 0x1a9   : > { %v735_v52 = vpop.f32.mrf.mxu0 }
 0x1ad   : > { %v541_v50 = vpop.f32.mrf.mxu2 }
 0x1ae   : > { %v567_v51 = vpop.f32.mrf.mxu1 }
 0x1b0   : > { %v650_v3 = vpop.f32.mrf.mxu3 }
 0x1b1   : > { %v2476_v55 = vpop.f32.mrf.mxu0 }
 0x1b5   : > { %v543_v53 = vpop.f32.mrf.mxu2 }
 0x1b6   : > { %v570_v54 = vpop.f32.mrf.mxu1 }
 0x1b8   : > { %v652_v8 = vpop.f32.mrf.mxu3 }
 0x1b9   : > { %v2478_v59 = vpop.f32.mrf.mxu0 }
 0x1bd   : > { %v621_v56 = vpop.f32.mrf.mxu2 }
 0x1be   : > { %v572_v57 = vpop.f32.mrf.mxu1  ;;  %v622_v33 = vadd.f32 %v621_v56, %v531_v45 }
 0x1bf   : > { %v2491_v57 = vand.u32 127, %v1033_v40 }
 0x1c0   : > { %v655_v19 = vpop.f32.mrf.mxu3  ;;  %v784_v36 = vadd.f32 %v735_v52, %v622_v33 }
 0x1c1   : > { %v2482_v1 = vpop.f32.mrf.mxu0 }
 0x1c2   : > { %v848_v54 = vadd.f32 %v811_v38, %v784_v36  ;;  %v826_v38 = vpop.permute.xlu1 %825 }
 0x1c5   : > { %v623_v58 = vpop.f32.mrf.mxu2 }
 0x1c6   : > { %v575_v61 = vpop.f32.mrf.mxu1  ;;  %v624_v42 = vadd.f32 %v623_v58, %v533_v49  ;;  %v816_v49 = vpop.permute.xlu0 %815 }
 0x1c8   : > { %v657_v31 = vpop.f32.mrf.mxu3 }
 0x1c9   : > { %v745_v5 = vpop.f32.mrf.mxu0 }
 0x1cd   : > { %v2480_v62 = vpop.f32.mrf.mxu2 }
 0x1ce   : > { %v577_v0 = vpop.f32.mrf.mxu1 }
 0x1d0   : > { %v660_v51 = vpop.f32.mrf.mxu3 }
 0x1d1   : > { %v747_v15 = vpop.f32.mrf.mxu0 }
 0x1d5   : > { %v2484_v2 = vpop.f32.mrf.mxu2 }
 0x1d6   : > { %v764_v4 = vpop.f32.mrf.mxu1 }
 0x1d9   : > { %v750_v28 = vpop.f32.mrf.mxu0 }
 0x1dd   : > { %v631_v6 = vpop.f32.mrf.mxu2 }
 0x1de   : > { %v632_v7 = vadd.f32 %v631_v6, %v541_v50  ;;  %v766_v9 = vpop.f32.mrf.mxu1  ;;  %v1037_v6 = vadd.s32 4294967295, %v2491_v57 }
 0x1e0   : > { %v792_v12 = vadd.f32 %v745_v5, %v632_v7  ;;  %vm1039_vm8 = vcmp.ge.s32.totalorder %v1037_v6, 0  ;;  %vm1041_vm9 = vcmp.lt.s32.totalorder %v1037_v6, 16 }
 0x1e1   : > { %v752_v45 = vpop.f32.mrf.mxu0  ;;  %vm2504_vm11 = vmand %vm1039_vm8, %vm1041_vm9 }
 0x1e2   : > { %v856_v14 = vadd.f32 %v831_v13, %v792_v12  ;;  %v662_v12 = vpop.f32.mrf.mxu3 }
 0x1e4   : > { %v1853_v16 = vmul.f32 -1.442695, %v856_v14  ;;  %v627_v14 = vadd.f32 %v2480_v62, %v2472_v44  ;;  %v629_v62 = vadd.f32 %v2484_v2, %v2474_v47 }
 0x1e5   : > { %v633_v17 = vpop.f32.mrf.mxu2 }
 0x1e6   : > { %2078 = vpow2.f32 %v1853_v16  ;;  %v634_v18 = vadd.f32 %v633_v17, %v543_v53  ;;  %v769_v20 = vpop.f32.mrf.mxu1  ;;  %v790_v2 = vadd.f32 %v2482_v1, %v629_v62  ;;  %v1952_v62 = vld [vmem:[%s2736_s4 + $0x78] sm:$0xff] }
 0x1e8   : > { %v794_v21 = vadd.f32 %v747_v15, %v634_v18 }
 0x1ea   : > { %v858_v24 = vadd.f32 %v836_v22, %v794_v21  ;;  %v788_v22 = vadd.f32 %v2478_v59, %v627_v14  ;;  %v665_v31 = vpop.f32.mrf.mxu3 }
 0x1eb   : > { %v1994_v31 = vld [vmem:[%s2752_s3 + $0x68] sm:$0xff] }
 0x1ec   : > { %v2079_v25 = vpop.eup %2078  ;;  %v1855_v26 = vmul.f32 -1.442695, %v858_v24  ;;  %v1950_v24 = vld [vmem:[%s2736_s4 + $0x68] sm:$0xff] }
 0x1ed   : > { %v896_v27 = vadd.f32 1.0, %v2079_v25  ;;  %v636_v29 = vpop.f32.mrf.mxu2 }
 0x1ee   : > { %2080 = vpow2.f32 %v1855_v26  ;;  %v637_v30 = vadd.f32 %v636_v29, %v546_v60  ;;  %v771_v32 = vpop.f32.mrf.mxu1  ;;  %v786_v60 = vadd.f32 %v2476_v55, %v624_v42 }
 0x1ef   : > { %2082 = vrcp.f32 %v896_v27  ;;  %v915_v61 = vand.u32 2147483648, %v896_v27  ;;  %v913_v3 = vand.u32 2147483647, %v896_v27  ;;  %vm909_vm5 = vweird.f32 %v896_v27 }
 0x1f0   : > { %v796_v34 = vadd.f32 %v750_v28, %v637_v30  ;;  %v850_v8 = vadd.f32 %v816_v49, %v786_v60 }
 0x1f1   : > { %vm914_vm7 = vcmp.eq.f32.partialorder %v913_v3, 8.507059e+37 }
 0x1f2   : > { %v860_v35 = vadd.f32 %v841_v10, %v796_v34  ;;  %v916_v10 = vor.u32 1.1754944e-38, %v915_v61  ;;  %v852_v34 = vadd.f32 %v2486_v23, %v788_v22  ;;  %v854_v23 = vadd.f32 %v826_v38, %v790_v2  ;;  %v1951_v22 = vld [vmem:[%s2736_s4 + $0x70] sm:$0xff] }
 0x1f4   : > { %v2081_v37 = vpop.eup %2080  ;;  %v1857_v39 = vmul.f32 -1.442695, %v860_v35 }
 0x1f5   : > { %v2083_v41 = vpop.eup %2082  ;;  %v2488_v43 = vadd.f32 1.0, %v2081_v37  ;;  %v638_v46 = vpop.f32.mrf.mxu2 }
 0x1f6   : > { %v905_v48 = vmul.f32 %v2083_v41, %v896_v27  ;;  %2084 = vpow2.f32 %v1857_v39  ;;  %v639_v50 = vadd.f32 %v638_v46, %v548_v63  ;;  %v774_v53 = vpop.f32.mrf.mxu1  ;;  %vm910_vm4 = vweird.f32 %v2083_v41 }
 0x1f7   : > { %2086 = vrcp.f32 %v2488_v43  ;;  %vm911_vm6 = vmor %vm909_vm5, %vm910_vm4  ;;  %v945_v18 = vand.u32 2147483648, %v2488_v43  ;;  %v943_v20 = vand.u32 2147483647, %v2488_v43  ;;  %vm939_vm12 = vweird.f32 %v2488_v43 }
 0x1f8   : > { %v906_v56 = vsub.f32 1.0, %v905_v48  ;;  %v798_v52 = vadd.f32 %v752_v45, %v639_v50  ;;  %2088 = vtanh.f32 %v848_v54 }
 0x1f9   : > { %v946_v28 = vor.u32 1.1754944e-38, %v945_v18  ;;  %vm944_vm14 = vcmp.eq.f32.partialorder %v943_v20, 8.507059e+37 }
 0x1fa   : > { %v862_v58 = vadd.f32 %v846_v11, %v798_v52  ;;  %v907_v0 = vmul.f32 %v2083_v41, %v906_v56  ;;  %v667_v52 = vpop.f32.mrf.mxu3 }
 0x1fc   : > { %v2085_v63 = vpop.eup %2084  ;;  %v1859_v4 = vmul.f32 -1.442695, %v862_v58  ;;  %v908_v5 = vadd.f32 %v2083_v41, %v907_v0 }
 0x1fd   : > { %v2087_v7 = vpop.eup %2086  ;;  %v2495_v9 = vadd.f32 1.0, %v2085_v63 }
 0x1fe   : > { %v935_v55 = vmul.f32 %v2087_v7, %v2488_v43  ;;  %2090 = vpow2.f32 %v1859_v4  ;;  %v912_v11 = vsel %vm911_vm6, %v2083_v41, %v908_v5  ;;  %v776_v13 = vpop.f32.mrf.mxu1  ;;  %v2089_v17 = vpop.eup %2088  ;;  %vm940_vm10 = vweird.f32 %v2087_v7 }
 0x1ff   : > { %2092 = vrcp.f32 %v2495_v9  ;;  %v917_v15 = vsel %vm914_vm7, %v916_v10, %v912_v11  ;;  %vm941_vm13 = vmor %vm939_vm12, %vm940_vm10  ;;  %v975_v37 = vand.u32 2147483648, %v2495_v9  ;;  %v973_v42 = vand.u32 2147483647, %v2495_v9 }
 0x200   : > { %v936_v16 = vsub.f32 1.0, %v935_v55  ;;  %2094 = vtanh.f32 %v850_v8  ;;  %v1024_v21 = vmul.f32 %v2089_v17, %v917_v15  ;;  %vm969_vm0 = vweird.f32 %v2495_v9 }
 0x201   : > { %v976_v1 = vor.u32 1.1754944e-38, %v975_v37  ;;  %vm974_vm5 = vcmp.eq.f32.partialorder %v973_v42, 8.507059e+37  ;;  %vm1465_vm12 = vcmp.lt.s32.totalorder %v2491_v57, 16 }
 0x202   : > { %v937_v19 = vmul.f32 %v2087_v7, %v936_v16  ;;  %v1049_v59 = vsel %vm2504_vm11, %v1024_v21, 0.0 }
 0x203   : > { %v1057_v39 = vpack.c.bf16 0.0, %v1049_v59  ;;  %v1993_v59 = vld [vmem:[%s2752_s3 + $0x60] sm:$0xff] }
 0x204   : > { %v2091_v44 = vpop.eup %2090  ;;  %v938_v25 = vadd.f32 %v2087_v7, %v937_v19 }
 0x205   : > { %v2093_v26 = vpop.eup %2092  ;;  %v902_v27 = vadd.f32 1.0, %v2091_v44  ;;  %v1103_v50 = vunpack.c.l.b16 %v1057_v39  ;;  %v1104_v53 = vunpack.c.h.b16 %v1057_v39  ;;  %v1949_v44 = vld [vmem:[%s2736_s4 + $0x60] sm:$0xff] }
 0x206   : > { %v965_v29 = vmul.f32 %v2093_v26, %v2495_v9  ;;  %v942_v30 = vsel %vm941_vm13, %v2087_v7, %v938_v25  ;;  %v779_v32 = vpop.f32.mrf.mxu1  ;;  %v2095_v33 = vpop.eup %2094  ;;  %vm970_vm15 = vweird.f32 %v2093_v26  ;;  %v1945_v25 = vld [vmem:[%s2736_s4 + $0x40] sm:$0xff] }
 0x207   : > { %2096 = vrcp.f32 %v902_v27  ;;  %v947_v47 = vsel %vm944_vm14, %v946_v28, %v942_v30  ;;  %vm971_vm4 = vmor %vm969_vm0, %vm970_vm15  ;;  %v1005_v63 = vand.u32 2147483648, %v902_v27  ;;  %v1003_v5 = vand.u32 2147483647, %v902_v27  ;;  %v1482_v28 = vld [vmem:[%s2738_s6 + $0x8] sm:$0xff] }
 0x208   : > { %v966_v35 = vsub.f32 1.0, %v965_v29  ;;  %v1026_v36 = vmul.f32 %v2095_v33, %v947_v47  ;;  %2098 = vtanh.f32 %v852_v34  ;;  %vm999_vm7 = vweird.f32 %v902_v27  ;;  %v1481_v29 = vld [vmem:[%s2738_s6] sm:$0xff]  ;;  %v1946_v30 = vld [vmem:[%s2736_s4 + $0x48] sm:$0xff] }
 0x209   : > { %2100 = vtanh.f32 %v854_v23  ;;  %v1006_v8 = vor.u32 1.1754944e-38, %v1005_v63  ;;  %vm1004_vm9 = vcmp.eq.f32.partialorder %v1003_v5, 8.507059e+37  ;;  %v2001_v23 = vld [vmem:[%s2752_s3 + $0xa0] sm:$0xff] }
 0x20a   : > { %v1051_v40 = vsel %vm2504_vm11, %v1026_v36, 0.0  ;;  %v967_v41 = vmul.f32 %v2093_v26, %v966_v35  ;;  %v1995_v36 = vld [vmem:[%s2752_s3 + $0x70] sm:$0xff] }
 0x20b   : > { %v1058_v43 = vpack.c.bf16 0.0, %v1051_v40  ;;  %v1997_v40 = vld [vmem:[%s2752_s3 + $0x80] sm:$0xff] }
 0x20c   : > { %v968_v46 = vadd.f32 %v2093_v26, %v967_v41 }
 0x20d   : > { %v2097_v48 = vpop.eup %2096  ;;  %v1105_v51 = vunpack.c.l.b16 %v1058_v43  ;;  %v1106_v54 = vunpack.c.h.b16 %v1058_v43 }
 0x20e   : > { %v995_v45 = vmul.f32 %v2097_v48, %v902_v27  ;;  %v972_v56 = vsel %vm971_vm4, %v2093_v26, %v968_v46  ;;  %v781_v60 = vpop.f32.mrf.mxu1  ;;  %v2099_v3 = vpop.eup %2098  ;;  %vm1000_vm6 = vweird.f32 %v2097_v48  ;;  %v1948_v26 = vld [vmem:[%s2736_s4 + $0x58] sm:$0xff]  ;;  %v1947_v27 = vld [vmem:[%s2736_s4 + $0x50] sm:$0xff] }
 0x20f   : > { %v1111_v61 = vpack.c.b16 %v1105_v51, %v1103_v50  ;;  %v977_v49 = vsel %vm974_vm5, %v976_v1, %v972_v56  ;;  %v1112_v58 = vpack.c.b16 %v1106_v54, %v1104_v53  ;;  %vm1001_vm8 = vmor %vm999_vm7, %vm1000_vm6  ;;  %v2101_v55 = vpop.eup %2100  ;;  %v1996_v46 = vld [vmem:[%s2752_s3 + $0x78] sm:$0xff]  ;;  %v1998_v1 = vld [vmem:[%s2752_s3 + $0x88] sm:$0xff] }
 0x210   : > { %v996_v0 = vsub.f32 1.0, %v995_v45  ;;  %v1028_v6 = vmul.f32 %v2099_v3, %v977_v49  ;;  %v1999_v50 = vld [vmem:[%s2752_s3 + $0x90] sm:$0xff]  ;;  %v2000_v53 = vld [vmem:[%s2752_s3 + $0x98] sm:$0xff] }
 0x211   : > { %1115 = vrot.lane.b32.xlu0 %v1111_v61, %s2254_s19  ;;  %v2003_v51 = vld [vmem:[%s2752_s3 + $0xb0] sm:$0xff]  ;;  %v2004_v54 = vld [vmem:[%s2752_s3 + $0xb8] sm:$0xff] }
 0x212   : > { %v997_v4 = vmul.f32 %v2097_v48, %v996_v0  ;;  %v1053_v10 = vsel %vm2504_vm11, %v1028_v6, 0.0 }
 0x213   : > { %v1059_v13 = vpack.c.bf16 0.0, %v1053_v10 }
 0x214   : > { %v998_v7 = vadd.f32 %v2097_v48, %v997_v4 }
 0x215   : > { %v1108_v16 = vunpack.c.h.b16 %v1059_v13  ;;  %v1107_v18 = vunpack.c.l.b16 %v1059_v13 }
 0x216   : > { %v1002_v9 = vsel %vm1001_vm8, %v2097_v48, %v998_v7  ;;  %v2002_v48 = vld [vmem:[%s2752_s3 + $0xa8] sm:$0xff] }
 0x217   : > { %v1007_v11 = vsel %vm1004_vm9, %v1006_v8, %v1002_v9 }
 0x218   : > { %v1030_v12 = vmul.f32 %v2101_v55, %v1007_v11 }
 0x21a   : > { %v1055_v14 = vsel %vm2504_vm11, %v1030_v12, 0.0 }
 0x21b   : > { %v1060_v15 = vpack.c.bf16 0.0, %v1055_v14 }
 0x21d   : > { %v1110_v17 = vunpack.c.h.b16 %v1060_v15  ;;  %v1109_v19 = vunpack.c.l.b16 %v1060_v15 }
 0x21f   : > { %v1114_v20 = vpack.c.b16 %v1110_v17, %v1108_v16  ;;  %v1113_v21 = vpack.c.b16 %v1109_v19, %v1107_v18 }
 0x221   : > { %1121 = vrot.lane.b32.xlu2 %v1114_v20, %s2254_s19  ;;  %1119 = vrot.lane.b32.xlu1 %v1113_v21, %s2254_s19 }
 0x222   : > { %1208 = vmatpush.bf16.msra.mxu3 %v1113_v21  ;;  %1266 = vrot.lane.b32.xlu0 %v1114_v20, %s2755_s28 }
 0x226   : > { %1209 = vmatpush.bf16.msra.mxu3 %v1111_v61 }
 0x229   : > { %1264 = vrot.lane.b32.xlu2 %v1113_v21, %s2755_s28  ;;  %1117 = vrot.lane.b32.xlu1 %v1112_v58, %s2254_s19 }
 0x22a   : > { %1362 = vperm.xlu0 %2077, %v1951_v22   ;;  %1913 = vmatmul.msk.bf16.vlgmr.msra.gmra.mxu3 %vm509_vm2, %v1993_v59 }
 0x231   : > { %1262 = vrot.lane.b32.xlu2 %v1112_v58, %s2755_s28  ;;  %1260 = vrot.lane.b32.xlu1 %v1111_v61, %s2755_s28  ;;  %s372_s28 = scalar_lea.vmem [#allocation4], %s2744_s27 }
 0x232   : > { %1357 = vperm.xlu0 %2077, %v1950_v24   ;;  %s1553_s30 = sshll.u32 %s372_s28, 4  ;;  %s1554_s30 = int_to_ptr.vmem [resolvable:$true] %s1553_s30 }
 0x239   : > { %1352 = vperm.xlu2 %2076, %v1949_v44   ;;  %1367 = vperm.xlu1 %2075, %v1952_v62  }
 0x23a   : > { %1332 = vperm.xlu0 %2077, %v1945_v25   ;;  %1914 = vmatmul.msk.bf16.gmra.mxu3 %vm509_vm2, %v1994_v31 }
 0x241   : > { %1347 = vperm.xlu2 %2076, %v1948_v26   ;;  %1342 = vperm.xlu1 %2075, %v1947_v27  }
 0x242   : > { %1490 = vperm.xlu0 %2077, %v1482_v28  }
 0x249   : > { %1485 = vperm.xlu2 %2076, %v1481_v29   ;;  %1337 = vperm.xlu1 %2075, %v1946_v30  }
 0x24a   : > { %1915 = vmatmul.msk.bf16.gmra.mxu3 %vm509_vm2, %v1995_v36 }
 0x25a   : > { %1916 = vmatmul.msk.bf16.gmra.mxu3 %vm509_vm2, %v1996_v46 }
 0x27b   : > { %v1122_v32 = vpop.permute.xlu2 %1121 }
 0x283   : > { %v1116_v33 = vpop.permute.xlu0 %1115  ;;  %v1265_v47 = vpop.permute.xlu2 %1264 }
 0x28b   : > { %v1263_v41 = vpop.permute.xlu2 %1262 }
 0x293   : > { %v1120_v34 = vpop.permute.xlu1 %1119  ;;  %v1353_v11 = vpop.permute.xlu2 %1352 }
 0x294   : > { %v1124_v2 = vsel %vm502_vm1, %v1120_v34, %v1122_v32  ;;  %v1267_v35 = vpop.permute.xlu0 %1266 }
 0x295   : > { %v1269_v37 = vsel %vm707_vm3, %v1265_v47, %v1267_v35  ;;  %1145 = vmatpush.bf16.msra.mxu2 %v1124_v2 }
 0x296   : > { %1290 = vmatpush.bf16.msra.mxu0 %v1269_v37 }
 0x29b   : > { %v1118_v38 = vpop.permute.xlu1 %1117 }
 0x29c   : > { %v1123_v39 = vsel %vm502_vm1, %v1116_v33, %v1118_v38  ;;  %v1363_v9 = vpop.permute.xlu0 %1362 }
 0x29d   : > { %1146 = vmatpush.bf16.msra.mxu2 %v1123_v39 }
 0x2a0   : > { %1893 = vmatmul.msk.bf16.vlgmr.msra.gmra.mxu2 %vm509_vm2, %v1997_v40 }
 0x2a3   : > { %v1261_v42 = vpop.permute.xlu1 %1260 }
 0x2a4   : > { %v1268_v43 = vsel %vm707_vm3, %v1261_v42, %v1263_v41  ;;  %v1358_v20 = vpop.permute.xlu0 %1357 }
 0x2a5   : > { %1291 = vmatpush.bf16.msra.mxu0 %v1268_v43 }
 0x2a8   : > { %1941 = vmatmul.msk.bf16.vlgmr.msra.gmra.mxu0 %vm509_vm2, %v2001_v23 }
 0x2ab   : > { %v1368_v18 = vpop.permute.xlu1 %1367 }
 0x2ac   : > { %v1333_v33 = vpop.permute.xlu0 %1332 }
 0x2ad   : > { %v1211_v45 = vpop.f32.mrf.mxu3 }
 0x2b0   : > { %1894 = vmatmul.msk.bf16.gmra.mxu2 %vm509_vm2, %v1998_v1 }
 0x2b3   : > { %v1343_v59 = vpop.permute.xlu1 %1342 }
 0x2b5   : > { %v1213_v56 = vpop.f32.mrf.mxu3 }
 0x2b8   : > { %1942 = vmatmul.msk.bf16.gmra.mxu0 %vm509_vm2, %v2002_v48 }
 0x2bd   : > { %v2615_v61 = vpop.f32.mrf.mxu3 }
 0x2c0   : > { %1895 = vmatmul.msk.bf16.gmra.mxu2 %vm509_vm2, %v1999_v50 }
 0x2c5   : > { %v2619_v3 = vpop.f32.mrf.mxu3 }
 0x2c8   : > { %1943 = vmatmul.msk.bf16.gmra.mxu0 %vm509_vm2, %v2003_v51 }
 0x2cd   : > { %v1221_v5 = vpop.f32.mrf.mxu3 }
 0x2d0   : > { %1896 = vmatmul.msk.bf16.gmra.mxu2 %vm509_vm2, %v2000_v53  ;;  %v1338_v53 = vpop.permute.xlu1 %1337 }
 0x2d5   : > { %v1223_v12 = vpop.f32.mrf.mxu3 }
 0x2d8   : > { %1944 = vmatmul.msk.bf16.gmra.mxu0 %vm509_vm2, %v2004_v54 }
 0x2dd   : > { %v1226_v22 = vpop.f32.mrf.mxu3 }
 0x2e5   : > { %v1228_v37 = vpop.f32.mrf.mxu3 }
 0x323   : > { %v1148_v52 = vpop.f32.mrf.mxu2 }
 0x324   : > { %v1212_v62 = vadd.f32 %v1211_v45, %v1148_v52 }
 0x325   : > { %v1293_v60 = vpop.f32.mrf.mxu0 }
 0x326   : > { %v1313_v30 = vadd.f32 %v1293_v60, %v1212_v62 }
 0x328   : > { %v1370_v2 = vadd.f32 %v1333_v33, %v1313_v30 }
 0x32b   : > { %v1150_v49 = vpop.f32.mrf.mxu2 }
 0x32c   : > { %v1214_v35 = vadd.f32 %v1213_v56, %v1150_v49 }
 0x32d   : > { %v1295_v58 = vpop.f32.mrf.mxu0 }
 0x32e   : > { %v1314_v23 = vadd.f32 %v1295_v58, %v1214_v35 }
 0x330   : > { %v1371_v52 = vadd.f32 %v1338_v53, %v1314_v23 }
 0x333   : > { %v2617_v0 = vpop.f32.mrf.mxu2 }
 0x334   : > { %v1217_v60 = vadd.f32 %v2615_v61, %v2617_v0 }
 0x335   : > { %v2621_v63 = vpop.f32.mrf.mxu0 }
 0x336   : > { %v1315_v61 = vadd.f32 %v2621_v63, %v1217_v60 }
 0x33b   : > { %v2623_v4 = vpop.f32.mrf.mxu2 }
 0x33c   : > { %v1219_v63 = vadd.f32 %v2619_v3, %v2623_v4  ;;  %v1348_v4 = vpop.permute.xlu2 %1347 }
 0x33d   : > { %v2625_v6 = vpop.f32.mrf.mxu0 }
 0x33e   : > { %v1316_v62 = vadd.f32 %v2625_v6, %v1219_v63 }
 0x343   : > { %v1158_v7 = vpop.f32.mrf.mxu2 }
 0x344   : > { %v1222_v8 = vadd.f32 %v1221_v5, %v1158_v7  ;;  %v1486_v53 = vpop.permute.xlu2 %1485 }
 0x345   : > { %v1303_v10 = vpop.f32.mrf.mxu0 }
 0x346   : > { %v1317_v55 = vadd.f32 %v1303_v10, %v1222_v8 }
 0x348   : > { %v1374_v13 = vadd.f32 %v1353_v11, %v1317_v55 }
 0x34a   : > { %v1953_v14 = vmul.f32 -1.442695, %v1374_v13 }
 0x34b   : > { %v1160_v15 = vpop.f32.mrf.mxu2 }
 0x34c   : > { %2102 = vpow2.f32 %v1953_v14  ;;  %v1224_v16 = vadd.f32 %v1223_v12, %v1160_v15 }
 0x34d   : > { %v1305_v17 = vpop.f32.mrf.mxu0 }
 0x34e   : > { %v1318_v19 = vadd.f32 %v1305_v17, %v1224_v16  ;;  %v1372_v17 = vadd.f32 %v1343_v59, %v1315_v61  ;;  %v1373_v59 = vadd.f32 %v1348_v4, %v1316_v62 }
 0x350   : > { %v1375_v21 = vadd.f32 %v1358_v20, %v1318_v19 }
 0x352   : > { %v2103_v24 = vpop.eup %2102  ;;  %v1954_v44 = vmul.f32 -1.442695, %v1375_v21 }
 0x353   : > { %v1394_v25 = vadd.f32 1.0, %v2103_v24  ;;  %v1163_v26 = vpop.f32.mrf.mxu2 }
 0x354   : > { %2104 = vpow2.f32 %v1954_v44  ;;  %v1227_v27 = vadd.f32 %v1226_v22, %v1163_v26 }
 0x355   : > { %2106 = vrcp.f32 %v1394_v25  ;;  %v1308_v28 = vpop.f32.mrf.mxu0  ;;  %v1409_v48 = vand.u32 2147483648, %v1394_v25  ;;  %v1407_v50 = vand.u32 2147483647, %v1394_v25  ;;  %vm1403_vm3 = vweird.f32 %v1394_v25 }
 0x356   : > { %v1319_v29 = vadd.f32 %v1308_v28, %v1227_v27 }
 0x357   : > { %v1410_v7 = vor.u32 1.1754944e-38, %v1409_v48  ;;  %vm1408_vm11 = vcmp.eq.f32.partialorder %v1407_v50, 8.507059e+37  ;;  %v2005_v50 = vld [vmem:[%s2737_s5] sm:$0xff] }
 0x358   : > { %v1376_v31 = vadd.f32 %v1363_v9, %v1319_v29 }
 0x35a   : > { %v2105_v32 = vpop.eup %2104  ;;  %v1955_v34 = vmul.f32 -1.442695, %v1376_v31 }
 0x35b   : > { %v2107_v47 = vpop.eup %2106  ;;  %v1395_v36 = vadd.f32 1.0, %v2105_v32  ;;  %v1165_v38 = vpop.f32.mrf.mxu2 }
 0x35c   : > { %v1399_v39 = vmul.f32 %v2107_v47, %v1394_v25  ;;  %2108 = vpow2.f32 %v1955_v34  ;;  %v1229_v40 = vadd.f32 %v1228_v37, %v1165_v38  ;;  %vm1404_vm1 = vweird.f32 %v2107_v47 }
 0x35d   : > { %2110 = vrcp.f32 %v1395_v36  ;;  %v1310_v41 = vpop.f32.mrf.mxu0  ;;  %vm1405_vm10 = vmor %vm1403_vm3, %vm1404_vm1  ;;  %v1424_v11 = vand.u32 2147483648, %v1395_v36  ;;  %v1422_v12 = vand.u32 2147483647, %v1395_v36  ;;  %vm1418_vm14 = vweird.f32 %v1395_v36 }
 0x35e   : > { %v1400_v42 = vsub.f32 1.0, %v1399_v39  ;;  %v1320_v43 = vadd.f32 %v1310_v41, %v1229_v40  ;;  %2112 = vtanh.f32 %v1370_v2 }
 0x35f   : > { %v1425_v21 = vor.u32 1.1754944e-38, %v1424_v11  ;;  %vm1423_vm0 = vcmp.eq.f32.partialorder %v1422_v12, 8.507059e+37 }
 0x360   : > { %v1377_v46 = vadd.f32 %v1368_v18, %v1320_v43  ;;  %v1401_v1 = vmul.f32 %v2107_v47, %v1400_v42 }
 0x362   : > { %v2109_v51 = vpop.eup %2108  ;;  %v1956_v54 = vmul.f32 -1.442695, %v1377_v46  ;;  %v1402_v45 = vadd.f32 %v2107_v47, %v1401_v1 }
 0x363   : > { %v2111_v56 = vpop.eup %2110  ;;  %v1396_v49 = vadd.f32 1.0, %v2109_v51  ;;  %v1515_v51 = vstv %s407_s12  ;;  %s1532_s12 = scalar_lea.sflag [#allocation5], %s2665_s18 }
 0x364   : > { %v1414_v58 = vmul.f32 %v2111_v56, %v1395_v36  ;;  %2114 = vpow2.f32 %v1956_v54  ;;  %v1406_v5 = vsel %vm1405_vm10, %v2107_v47, %v1402_v45  ;;  %v2113_v8 = vpop.eup %2112  ;;  %vm1419_vm13 = vweird.f32 %v2111_v56  ;;  %vm1961_vm10 = vmpackc.low %vm1465_vm12, %vm1465_vm12 }
 0x365   : > { %2116 = vrcp.f32 %v1396_v49  ;;  %v1411_v10 = vsel %vm1408_vm11, %v1410_v7, %v1406_v5  ;;  %vm1420_vm15 = vmor %vm1418_vm14, %vm1419_vm13  ;;  %v1439_v25 = vand.u32 2147483648, %v1396_v49  ;;  %v1437_v28 = vand.u32 2147483647, %v1396_v49 }
 0x366   : > { %v1415_v9 = vsub.f32 1.0, %v1414_v58  ;;  %v2637_v0 = vmul.f32 %v2113_v8, %v1411_v10  ;;  %2118 = vtanh.f32 %v1371_v52  ;;  %vm1433_vm5 = vweird.f32 %v1396_v49 }
 0x367   : > { %v1440_v31 = vor.u32 1.1754944e-38, %v1439_v25  ;;  %vm1438_vm7 = vcmp.eq.f32.partialorder %v1437_v28, 8.507059e+37 }
 0x368   : > { %v1416_v55 = vmul.f32 %v2111_v56, %v1415_v9  ;;  %v1469_v13 = vsel %vm1465_vm12, %v2637_v0, 0.0 }
 0x369   : > { %1473 = vst [vmem:[%s2634_s10] sm:$0xff] %v1469_v13 }
 0x36a   : > { %v2115_v14 = vpop.eup %2114  ;;  %v1417_v15 = vadd.f32 %v2111_v56, %v1416_v55 }
 0x36b   : > { %v2117_v16 = vpop.eup %2116  ;;  %v1397_v18 = vadd.f32 1.0, %v2115_v14 }
 0x36c   : > { %v1429_v19 = vmul.f32 %v2117_v16, %v1396_v49  ;;  %v1421_v20 = vsel %vm1420_vm15, %v2111_v56, %v1417_v15  ;;  %v2119_v22 = vpop.eup %2118  ;;  %vm1434_vm4 = vweird.f32 %v2117_v16 }
 0x36d   : > { %2120 = vrcp.f32 %v1397_v18  ;;  %v1426_v44 = vsel %vm1423_vm0, %v1425_v21, %v1421_v20  ;;  %vm1435_vm6 = vmor %vm1433_vm5, %vm1434_vm4  ;;  %v1454_v35 = vand.u32 2147483648, %v1397_v18  ;;  %v1452_v37 = vand.u32 2147483647, %v1397_v18 }
 0x36e   : > { %v1430_v24 = vsub.f32 1.0, %v1429_v19  ;;  %2122 = vtanh.f32 %v1372_v17  ;;  %v1459_v26 = vmul.f32 %v2119_v22, %v1426_v44  ;;  %vm1448_vm9 = vweird.f32 %v1397_v18 }
 0x36f   : > { %2124 = vtanh.f32 %v1373_v59  ;;  %v1455_v40 = vor.u32 1.1754944e-38, %v1454_v35  ;;  %vm1453_vm3 = vcmp.eq.f32.partialorder %v1452_v37, 8.507059e+37 }
 0x370   : > { %v1431_v27 = vmul.f32 %v2117_v16, %v1430_v24  ;;  %v1470_v3 = vsel %vm1465_vm12, %v1459_v26, 0.0  ;;  %v1965_v48 = vpack.c.bf16 %v1459_v26, %v2637_v0 }
 0x371   : > { %1474 = vst [vmem:[%s2634_s10 + $0x8] sm:$0xff] %v1470_v3 }
 0x372   : > { %v1432_v29 = vadd.f32 %v2117_v16, %v1431_v27 }
 0x373   : > { %v2121_v30 = vpop.eup %2120 }
 0x374   : > { %v1444_v32 = vmul.f32 %v2121_v30, %v1397_v18  ;;  %v1436_v33 = vsel %vm1435_vm6, %v2117_v16, %v1432_v29  ;;  %v2123_v6 = vpop.eup %2122  ;;  %vm1449_vm8 = vweird.f32 %v2121_v30 }
 0x375   : > { %v1441_v34 = vsel %vm1438_vm7, %v1440_v31, %v1436_v33  ;;  %vm1450_vm1 = vmor %vm1448_vm9, %vm1449_vm8  ;;  %v2125_v42 = vpop.eup %2124 }
 0x376   : > { %v1445_v47 = vsub.f32 1.0, %v1444_v32  ;;  %v1460_v2 = vmul.f32 %v2123_v6, %v1441_v34 }
 0x378   : > { %v1446_v36 = vmul.f32 %v2121_v30, %v1445_v47  ;;  %v1471_v38 = vsel %vm1465_vm12, %v1460_v2, 0.0 }
 0x379   : > { %1475 = vst [vmem:[%s2634_s10 + $0x10] sm:$0xff] %v1471_v38 }
 0x37a   : > { %v1447_v39 = vadd.f32 %v2121_v30, %v1446_v36 }
 0x37c   : > { %v1451_v41 = vsel %vm1450_vm1, %v2121_v30, %v1447_v39 }
 0x37d   : > { %v1456_v43 = vsel %vm1453_vm3, %v1455_v40, %v1451_v41 }
 0x37e   : > { %v1461_v23 = vmul.f32 %v2125_v42, %v1456_v43 }
 0x380   : > { %v1472_v46 = vsel %vm1465_vm12, %v1461_v23, 0.0  ;;  %v1962_v1 = vpack.c.bf16 %v1461_v23, %v1460_v2 }
 0x381   : > { %1476 = vst [vmem:[%s2634_s10 + $0x18] sm:$0xff] %v1472_v46  ;;  %s1555_s10 = sshll.u32 %s1551_s21, 4  ;;  %s1556_s10 = int_to_ptr.hbm [resolvable:$true] %s1555_s10 }
 0x382   : > { %1963 = vmatpush.bf16.msk.msra.mxu1 %vm1961_vm10, %v1962_v1  ;;  %s2152_s19 = sshra.s32 %s1556_s10, 4  ;;  %s2153_s19 = int_to_ptr.hbm [resolvable:$true] %s2152_s19 }
 0x383   : > { %s2154_s29 = scalar_lea.hbm %s2153_s19, 8  ;;  %p2159_p1 = scmp.lt.s32.totalorder %s2153_s19, %s2740_s8 }
 0x384   : > { %p2155_p12 = scmp.ne.s32.totalorder %s2153_s19, %s2154_s29  ;;  %p2160_p2 = scmp.lt.s32.totalorder %s2158_s1, %s2154_s29 }
 0x386   : > { %1966 = vmatpush.bf16.msk.msra.mxu1 %vm1961_vm10, %v1965_v48  ;;  %p2156_p13 = pnand %p2155_p12, %p2350_p4  ;;  %p2161_p3 = por %p2160_p2, %p2159_p1 }
 0x388   : > { %p2157_p0 = pneg %p2156_p13 }
 0x389   : > { %1967 = vmatmul.msk.bf16.vlgmr.msra.gmra.mxu1 %vm509_vm2, %v2005_v50  ;;  %vm2675_vm2 = vcmp.lt.s32.totalorder %v2491_v57, %v1515_v51 }
 0x38a   : > { %p2162_p5 = pnand %p2161_p3, %p2157_p0 }
 0x406   : > { %v1510_v54 = vpop.f32.mrf.mxu1 }
 0x407   : > { %v1511_v56 = vadd.f32 %v1510_v54, %v1486_v53 }
 0x409   : > { %v1519_v52 = vsel %vm2675_vm2, %v1511_v56, 0.0 }
 0x40a   : > { %1521 = vst [vmem:[%s372_s28] sm:$0xff] %v1519_v52 }
 0x40b   : > { %2165 = shalt.err (!%p2162_p5)
}
 0x40c   : > { %2010 = dma.vmem_to_hbm [thread:$0]  (%p2350_p4), %s1554_s30, 128, %s1556_s10, %s1532_s12   ;;  %v1491_v57 = vpop.permute.xlu0 %1490 }
 0x40d   : > { %s2758_s23 = sshll.u32 %s2665_s18, 3  ;;  %s1570_s26 = sshll.u32 %s1566_s11, 4  ;;  %s1571_s26 = int_to_ptr.hbm [resolvable:$true] %s1570_s26 }
 0x40e   : > { %s379_s28 = scalar_lea.vmem [#allocation6], %s2758_s23  ;;  %v1512_v60 = vpop.f32.mrf.mxu1  ;;  %s1537_s1 = scalar_lea.sflag [#allocation7], %s2665_s18 }
 0x40f   : > { %s1568_s16 = sshll.u32 %s379_s28, 4  ;;  %v1513_v49 = vadd.f32 %v1512_v60, %v1491_v57  ;;  %s2180_s2 = sshra.s32 %s1571_s26, 4  ;;  %s1569_s16 = int_to_ptr.vmem [resolvable:$true] %s1568_s16  ;;  %s2181_s2 = int_to_ptr.hbm [resolvable:$true] %s2180_s2 }
 0x410   : > { %s2182_s3 = scalar_lea.hbm %s2181_s2, 8  ;;  %s2186_s10 = scalar_lea.hbm %s2741_s9, 16 }
 0x411   : > { %v1520_v58 = vsel %vm2675_vm2, %v1513_v49, 0.0  ;;  %p2183_p6 = scmp.ne.s32.totalorder %s2181_s2, %s2182_s3  ;;  %p2187_p10 = scmp.lt.s32.totalorder %s2181_s2, %s2741_s9 }
 0x412   : > { %1522 = vst [vmem:[%s379_s28] sm:$0xff] %v1520_v58  ;;  %p2188_p11 = scmp.lt.s32.totalorder %s2186_s10, %s2182_s3 }
 0x413   : > { %p2184_p7 = pnand %p2183_p6, %p2350_p4 }
 0x414   : > { %p2189_p12 = por %p2188_p11, %p2187_p10 }
 0x415   : > { %p2185_p9 = pneg %p2184_p7 }
 0x417   : > { %p2190_p13 = pnand %p2189_p12, %p2185_p9 }
 0x419   : > { %2193 = shalt.err (!%p2190_p13)
}
 0x41a   : > { %2011 = dma.vmem_to_hbm [thread:$0]  (%p2350_p4), %s1569_s16, 128, %s1571_s26, %s1537_s1  }
 0x41b PF: > { %p2021_p0 = scmp.ge.s32.totalorder %s2250_s0, 2  ;;  %s1593_s18 = sand.u32 1, %s2230_s13  }
 0x41c   : > { %s1594_s19 = scalar_lea.sflag [#allocation5], %s1593_s18 }
 0x41d   : > { %p2015_p1 = pnand %p2021_p0, %p2357_p8 }
 0x41f   : > { %p2016_p2 = pneg %p2015_p1 }
 0x421   : > { %2221 = dma.done.wait (%p2016_p2), %s1594_s19, 128  }
 0x422   : > { %2223 = vsyncadd (%p2016_p2), %s1594_s19, 4294967168  ;;  %s1604_s29 = scalar_lea.sflag [#allocation7], %s1593_s18 }
 0x423   : > { %2225 = dma.done.wait (%p2016_p2), %s1604_s29, 128  }
 0x424   : > { %2227 = vsyncadd (%p2016_p2), %s1604_s29, 4294967168  ;;  %s34_s0 = sadd.s32 1, %s2250_s0   ;;  %s2759_s13 = smov %s2234_s14 }
 0x425   : > { %p31_p3 = scmp.ge.s32.totalorder %s34_s0, 4   ;;  %s2760_s14 = smov %s2238_s15 }
 0x426   : > { %s2761_s15 = smov %s2363_s25  ;;  %s2762_s16 = smov %s2246_s17 }
 0x427   : > { %s2763_s17 = smov %s2765_s20  ;;  %33 = sbr.rel (!%p31_p3) target bundleno = 14 (0xe), region = 117 }
 0x42c   :  { %1610 = vsyncpa [#allocation5], 1 }
 0x42d   :  { %1612 = vsyncpa [#allocation5 + $0x1], 1 }
 0x42e   :  { %1613 = vsyncpa [#allocation7], 1 }
 0x42f   :  { %1615 = vsyncpa [#allocation7 + $0x1], 1 }

</bundles_post_ra>
